<compile_context>
chip_gen: v7x
topology: tpu7x:2x2x1
jax: 0.10.0
libtpu: 0.0.40
codegen_flags: <defaults>
</compile_context>

<pallas_src>
import jax
import jax.numpy as jnp
from jax.experimental import pallas as pl
from jax.experimental.pallas import tpu as pltpu

OUTPUT_DIM = 4    # feature dim of x (== output_dim of the VAE)
HIDDEN_DIM = 32
LATENT_DIM = 8
T_ENC = 8
T_DEC = 8
BATCH = 2


def _elu(x):
    # ELU(alpha=1); clamp the exp argument so the unselected branch stays finite.
    return jnp.where(x > 0.0, x, jnp.exp(jnp.minimum(x, 0.0)) - 1.0)


# ---------------------------------------------------------------------------
# Fused kernel: GRU encoder (time-reversed) + hid2lat + reparameterize +
#               Neural-ODE (Euler) decode + deferred l2h/h2o readout.
#   xt_ref    : (T*B, D+1)  flattened (x, dt) sequence (NOT reversed)
#   eps_ref   : (B, L)      reparameterization noise
#   tdec_ref  : (T_dec,)    decoder timestamps (SMEM, scalar-indexed)
#   outputs   : xs (T_dec*B, D), z (B, L), mu (B, L), logvar (B, L)
# ---------------------------------------------------------------------------
def odevae_fused_kernel(xt_ref, eps_ref, tdec_ref,
                        w_ih_ref, b_i_ref, w_hh_ref, b_hn_ref,
                        w_h2l_ref, b_h2l_ref,
                        ode_w1_ref, ode_b1_ref, ode_w2_ref, ode_b2_ref,
                        ode_w3_ref, ode_b3_ref,
                        w_l2h_ref, b_l2h_ref, w_h2o_ref, b_h2o_ref,
                        xs_ref, z_ref, mu_ref, logvar_ref,
                        zs_sc):
    TB = xt_ref.shape[0]
    B, L = eps_ref.shape
    T = TB // B
    H = w_hh_ref.shape[0]
    T_dec = tdec_ref.shape[0]

    # ---- GRU encoder ------------------------------------------------------
    # Batched input projection for all timesteps at once (M = T*B), biases
    # b_ir+b_hr / b_iz+b_hz / b_in already folded into b_i on the host.
    x_proj = (jnp.dot(xt_ref[...], w_ih_ref[...],
                      preferred_element_type=jnp.float32) + b_i_ref[...])  # (T*B, 3H)

    w_hh = w_hh_ref[...]
    b_hn = b_hn_ref[...]

    h = jnp.zeros((B, H), dtype=jnp.float32)
    for i in range(T):                      # fully unrolled, static trip count
        row = (T - 1 - i) * B               # time reversal via indexing
        g_x = x_proj[row:row + B, :]        # (B, 3H) static slice
        g_h = jnp.dot(h, w_hh, preferred_element_type=jnp.float32)  # (B, 3H)
        r = jax.nn.sigmoid(g_x[:, :H] + g_h[:, :H])
        zg = jax.nn.sigmoid(g_x[:, H:2 * H] + g_h[:, H:2 * H])
        n = jnp.tanh(g_x[:, 2 * H:] + r * (g_h[:, 2 * H:] + b_hn))
        h = (1.0 - zg) * n + zg * h

    z0_full = (jnp.dot(h, w_h2l_ref[...], preferred_element_type=jnp.float32)
               + b_h2l_ref[...])            # (B, 2L)
    mu = z0_full[:, :L]
    logvar = z0_full[:, L:]
    mu_ref[...] = mu
    logvar_ref[...] = logvar

    # ---- reparameterize ---------------------------------------------------
    z0 = mu + eps_ref[...] * jnp.exp(0.5 * logvar)
    z_ref[...] = z0

    # ---- Neural-ODE decode (explicit Euler), readout deferred -------------
    w1 = ode_w1_ref[...]; b1 = ode_b1_ref[...]
    w2 = ode_w2_ref[...]; b2 = ode_b2_ref[...]
    w3 = ode_w3_ref[...]; b3 = ode_b3_ref[...]

    zs_sc[0:B, :] = z0
    z_cur = z0
    for i in range(1, T_dec):               # fully unrolled, static trip count
        dt = tdec_ref[i] - tdec_ref[i - 1]  # scalar from SMEM
        h1 = _elu(jnp.dot(z_cur, w1, preferred_element_type=jnp.float32) + b1)
        h2 = _elu(jnp.dot(h1, w2, preferred_element_type=jnp.float32) + b2)
        dz = jnp.dot(h2, w3, preferred_element_type=jnp.float32) + b3
        z_cur = z_cur + dt * dz             # one explicit Euler step per interval
        zs_sc[i * B:(i + 1) * B, :] = z_cur

    # Batched readout at M = T_dec*B (instead of per-step M = B matmuls).
    zs_all = zs_sc[...]                                              # (T_dec*B, L)
    hs = (jnp.dot(zs_all, w_l2h_ref[...], preferred_element_type=jnp.float32)
          + b_l2h_ref[...])
    xs = (jnp.dot(hs, w_h2o_ref[...], preferred_element_type=jnp.float32)
          + b_h2o_ref[...])
    xs_ref[...] = xs.astype(xs_ref.dtype)


# ---------------------------------------------------------------------------
# Wrapper / glue
# ---------------------------------------------------------------------------
def _vmem():
    return pl.BlockSpec(memory_space=pltpu.MemorySpace.VMEM)


def _smem():
    return pl.BlockSpec(memory_space=pltpu.MemorySpace.SMEM)


@jax.jit
def odevae_forward(params, x, t_encoder, t_decoder, eps):
    T, B, D = x.shape
    L = LATENT_DIM
    T_dec = t_decoder.shape[0]

    # ---- RNNEncoder preprocessing (cheap XLA glue) ----
    # t[1:] = t[:-1] - t[1:]; t[0] = 0
    td = jnp.concatenate(
        [jnp.zeros_like(t_encoder[:1]), t_encoder[:-1] - t_encoder[1:]], axis=0)
    xt = jnp.concatenate([x, td], axis=-1).astype(jnp.float32)
    xt2d = xt.reshape(T * B, D + 1)          # flattened; reversal done in-kernel
    t_dec_1d = t_decoder[:, 0, 0].astype(jnp.float32)   # matches PyTorch t[:, 0, 0]

    inputs = [xt2d, eps.astype(jnp.float32), t_dec_1d,
              params["w_ih"], params["b_i"], params["w_hh"], params["b_hn"],
              params["w_h2l"], params["b_h2l"],
              params["ode_w1"], params["ode_b1"],
              params["ode_w2"], params["ode_b2"],
              params["ode_w3"], params["ode_b3"],
              params["w_l2h"], params["b_l2h"],
              params["w_h2o"], params["b_h2o"]]

    out_shapes = (
        jax.ShapeDtypeStruct((T_dec * B, D), jnp.float32),   # xs (flat)
        jax.ShapeDtypeStruct((B, L), jnp.float32),           # z
        jax.ShapeDtypeStruct((B, L), jnp.float32),           # mu
        jax.ShapeDtypeStruct((B, L), jnp.float32),           # logvar
    )

    xs_flat, z, mu, logvar = pl.pallas_call(
        odevae_fused_kernel,
        out_shape=out_shapes,
        in_specs=[_vmem(), _vmem(), _smem()] + [_vmem()] * 16,
        out_specs=(_vmem(), _vmem(), _vmem(), _vmem()),
        scratch_shapes=[pltpu.VMEM((T_dec * B, L), jnp.float32)],
    )(*inputs)

    xs = xs_flat.reshape(T_dec, B, D)
    return xs, z, mu, logvar


# ---------------------------------------------------------------------------
# Deterministic parameter init (PyTorch-style uniform(-1/sqrt(fan_in), ...)),
# with GRU weights/biases packed for the fused kernel.
# ---------------------------------------------------------------------------
def _uniform(key, shape, k):
    return jax.random.uniform(key, shape, jnp.float32, -k, k)


def init_params(key):
    H, L, D = HIDDEN_DIM, LATENT_DIM, OUTPUT_DIM
    keys = jax.random.split(key, 32)
    it = iter(keys)
    p = {}

    # GRU(input_dim + 1, hidden_dim); gates r, z, n (weights pre-transposed).
    kg = 1.0 / (H ** 0.5)
    gru_in = D + 1
    raw = {}
    for gate in ("r", "z", "n"):
        raw[f"w_i{gate}"] = _uniform(next(it), (gru_in, H), kg)
        raw[f"w_h{gate}"] = _uniform(next(it), (H, H), kg)
        raw[f"b_i{gate}"] = _uniform(next(it), (1, H), kg)
        raw[f"b_h{gate}"] = _uniform(next(it), (1, H), kg)

    # Pack: W_ih = [w_ir | w_iz | w_in], W_hh = [w_hr | w_hz | w_hn],
    # b_i = [b_ir+b_hr | b_iz+b_hz | b_in]; b_hn stays separate (inside r*(...)).
    p["w_ih"] = jnp.concatenate([raw["w_ir"], raw["w_iz"], raw["w_in"]], axis=1)
    p["w_hh"] = jnp.concatenate([raw["w_hr"], raw["w_hz"], raw["w_hn"]], axis=1)
    p["b_i"] = jnp.concatenate(
        [raw["b_ir"] + raw["b_hr"], raw["b_iz"] + raw["b_hz"], raw["b_in"]], axis=1)
    p["b_hn"] = raw["b_hn"]

    def lin(in_dim, out_dim, name):
        kk = 1.0 / (in_dim ** 0.5)
        p[f"w_{name}"] = _uniform(next(it), (in_dim, out_dim), kk)
        p[f"b_{name}"] = _uniform(next(it), (1, out_dim), kk)

    lin(H, 2 * L, "h2l")          # hid2lat
    lin(L, H, "l2h")              # decoder l2h
    lin(H, D, "h2o")              # decoder h2o

    # ODEFunc (time_invariant=True): lin1 L->H, lin2 H->H, lin3 H->L
    for name, (i_, o_) in {"1": (L, H), "2": (H, H), "3": (H, L)}.items():
        kk = 1.0 / (i_ ** 0.5)
        p[f"ode_w{name}"] = _uniform(next(it), (i_, o_), kk)
        p[f"ode_b{name}"] = _uniform(next(it), (1, o_), kk)

    return p


if __name__ == "__main__":
    key = jax.random.PRNGKey(0)
    kp, kx, kt, ke = jax.random.split(key, 4)

    params = init_params(kp)
    x = jax.random.normal(kx, (T_ENC, BATCH, OUTPUT_DIM), jnp.float32)
    # strictly increasing timestamps, shared for encoder & decoder
    t_vals = jnp.cumsum(
        jax.random.uniform(kt, (T_ENC, BATCH, 1), jnp.float32, 0.05, 0.2), axis=0)
    t_encoder = t_vals
    t_decoder = t_vals
    eps = jax.random.normal(ke, (BATCH, LATENT_DIM), jnp.float32)

    xs, z, mu, logvar = odevae_forward(params, x, t_encoder, t_decoder, eps)
    jax.block_until_ready((xs, z, mu, logvar))

    assert xs.shape == (T_DEC, BATCH, OUTPUT_DIM)
    assert z.shape == (BATCH, LATENT_DIM)
    assert mu.shape == (BATCH, LATENT_DIM) and logvar.shape == (BATCH, LATENT_DIM)
    assert bool(jnp.all(jnp.isfinite(xs))) and bool(jnp.all(jnp.isfinite(z)))
    print("KERNEL_OK")
</pallas_src>

<mosaic_0001>
module attributes {stable_mosaic.version = 11 : i64} {
  func.func @odevae_fused_kernel(%arg0: memref<16x5xf32, #tpu.memory_space<vmem>>, %arg1: memref<2x8xf32, #tpu.memory_space<vmem>>, %arg2: memref<8xf32, #tpu.memory_space<smem>>, %arg3: memref<5x96xf32, #tpu.memory_space<vmem>>, %arg4: memref<1x96xf32, #tpu.memory_space<vmem>>, %arg5: memref<32x96xf32, #tpu.memory_space<vmem>>, %arg6: memref<1x32xf32, #tpu.memory_space<vmem>>, %arg7: memref<32x16xf32, #tpu.memory_space<vmem>>, %arg8: memref<1x16xf32, #tpu.memory_space<vmem>>, %arg9: memref<8x32xf32, #tpu.memory_space<vmem>>, %arg10: memref<1x32xf32, #tpu.memory_space<vmem>>, %arg11: memref<32x32xf32, #tpu.memory_space<vmem>>, %arg12: memref<1x32xf32, #tpu.memory_space<vmem>>, %arg13: memref<32x8xf32, #tpu.memory_space<vmem>>, %arg14: memref<1x8xf32, #tpu.memory_space<vmem>>, %arg15: memref<8x32xf32, #tpu.memory_space<vmem>>, %arg16: memref<1x32xf32, #tpu.memory_space<vmem>>, %arg17: memref<32x4xf32, #tpu.memory_space<vmem>>, %arg18: memref<1x4xf32, #tpu.memory_space<vmem>>, %arg19: memref<16x4xf32, #tpu.memory_space<vmem>>, %arg20: memref<2x8xf32, #tpu.memory_space<vmem>>, %arg21: memref<2x8xf32, #tpu.memory_space<vmem>>, %arg22: memref<2x8xf32, #tpu.memory_space<vmem>>, %arg23: memref<16x8xf32, #tpu.memory_space<vmem>>) attributes {dimension_semantics = [], scalar_prefetch = 0 : i64, scratch_operands = 1 : i64, tpu.core_type = #tpu.core_type<tc>} {
    %c0 = arith.constant 0 : index
    %c0_0 = arith.constant 0 : index
    %0 = vector.load %arg0[%c0, %c0_0] : memref<16x5xf32, #tpu.memory_space<vmem>>, vector<16x5xf32>
    %c0_1 = arith.constant 0 : index
    %c0_2 = arith.constant 0 : index
    %1 = vector.load %arg3[%c0_1, %c0_2] : memref<5x96xf32, #tpu.memory_space<vmem>>, vector<5x96xf32>
    %cst = arith.constant dense<0.000000e+00> : vector<16x96xf32>
    %2 = tpu.matmul %0, %1, %cst {dimension_numbers = #tpu.dot_dimension_numbers<[1], [0], [0], [1], [0, 0, 1, 1], [], []>} : vector<16x5xf32>, vector<5x96xf32>, vector<16x96xf32> -> vector<16x96xf32>
    %c0_3 = arith.constant 0 : index
    %c0_4 = arith.constant 0 : index
    %3 = vector.load %arg4[%c0_3, %c0_4] : memref<1x96xf32, #tpu.memory_space<vmem>>, vector<1x96xf32>
    %4 = vector.broadcast %3 : vector<1x96xf32> to vector<16x96xf32>
    %5 = arith.addf %2, %4 : vector<16x96xf32>
    %c0_5 = arith.constant 0 : index
    %c0_6 = arith.constant 0 : index
    %6 = vector.load %arg5[%c0_5, %c0_6] : memref<32x96xf32, #tpu.memory_space<vmem>>, vector<32x96xf32>
    %c0_7 = arith.constant 0 : index
    %c0_8 = arith.constant 0 : index
    %7 = vector.load %arg6[%c0_7, %c0_8] : memref<1x32xf32, #tpu.memory_space<vmem>>, vector<1x32xf32>
    %cst_9 = arith.constant 0.000000e+00 : f32
    %8 = vector.broadcast %cst_9 : f32 to vector<2x32xf32>
    %9 = vector.extract_strided_slice %5 {offsets = [14, 0], sizes = [2, 96], strides = [1, 1]} : vector<16x96xf32> to vector<2x96xf32>
    %cst_10 = arith.constant dense<0.000000e+00> : vector<2x96xf32>
    %10 = tpu.matmul %8, %6, %cst_10 {dimension_numbers = #tpu.dot_dimension_numbers<[1], [0], [0], [1], [0, 0, 1, 1], [], []>} : vector<2x32xf32>, vector<32x96xf32>, vector<2x96xf32> -> vector<2x96xf32>
    %11 = vector.extract_strided_slice %9 {offsets = [0, 0], sizes = [2, 32], strides = [1, 1]} : vector<2x96xf32> to vector<2x32xf32>
    %12 = vector.extract_strided_slice %10 {offsets = [0, 0], sizes = [2, 32], strides = [1, 1]} : vector<2x96xf32> to vector<2x32xf32>
    %13 = arith.addf %11, %12 : vector<2x32xf32>
    %14 = arith.negf %13 : vector<2x32xf32>
    %15 = math.exp %14 : vector<2x32xf32>
    %cst_11 = arith.constant 1.000000e+00 : f32
    %16 = vector.broadcast %cst_11 : f32 to vector<2x32xf32>
    %17 = arith.addf %16, %15 : vector<2x32xf32>
    %18 = arith.divf %16, %17 : vector<2x32xf32>
    %19 = vector.extract_strided_slice %9 {offsets = [0, 32], sizes = [2, 32], strides = [1, 1]} : vector<2x96xf32> to vector<2x32xf32>
    %20 = vector.extract_strided_slice %10 {offsets = [0, 32], sizes = [2, 32], strides = [1, 1]} : vector<2x96xf32> to vector<2x32xf32>
    %21 = arith.addf %19, %20 : vector<2x32xf32>
    %22 = arith.negf %21 : vector<2x32xf32>
    %23 = math.exp %22 : vector<2x32xf32>
    %cst_12 = arith.constant 1.000000e+00 : f32
    %24 = vector.broadcast %cst_12 : f32 to vector<2x32xf32>
    %25 = arith.addf %24, %23 : vector<2x32xf32>
    %26 = arith.divf %24, %25 : vector<2x32xf32>
    %27 = vector.extract_strided_slice %9 {offsets = [0, 64], sizes = [2, 32], strides = [1, 1]} : vector<2x96xf32> to vector<2x32xf32>
    %28 = vector.extract_strided_slice %10 {offsets = [0, 64], sizes = [2, 32], strides = [1, 1]} : vector<2x96xf32> to vector<2x32xf32>
    %29 = vector.broadcast %7 : vector<1x32xf32> to vector<2x32xf32>
    %30 = arith.addf %28, %29 : vector<2x32xf32>
    %31 = arith.mulf %18, %30 : vector<2x32xf32>
    %32 = arith.addf %27, %31 : vector<2x32xf32>
    %33 = math.tanh %32 : vector<2x32xf32>
    %cst_13 = arith.constant 1.000000e+00 : f32
    %34 = vector.broadcast %cst_13 : f32 to vector<2x32xf32>
    %35 = arith.subf %34, %26 : vector<2x32xf32>
    %36 = arith.mulf %35, %33 : vector<2x32xf32>
    %37 = arith.mulf %26, %8 : vector<2x32xf32>
    %38 = arith.addf %36, %37 : vector<2x32xf32>
    %39 = vector.extract_strided_slice %5 {offsets = [12, 0], sizes = [2, 96], strides = [1, 1]} : vector<16x96xf32> to vector<2x96xf32>
    %cst_14 = arith.constant dense<0.000000e+00> : vector<2x96xf32>
    %40 = tpu.matmul %38, %6, %cst_14 {dimension_numbers = #tpu.dot_dimension_numbers<[1], [0], [0], [1], [0, 0, 1, 1], [], []>} : vector<2x32xf32>, vector<32x96xf32>, vector<2x96xf32> -> vector<2x96xf32>
    %41 = vector.extract_strided_slice %39 {offsets = [0, 0], sizes = [2, 32], strides = [1, 1]} : vector<2x96xf32> to vector<2x32xf32>
    %42 = vector.extract_strided_slice %40 {offsets = [0, 0], sizes = [2, 32], strides = [1, 1]} : vector<2x96xf32> to vector<2x32xf32>
    %43 = arith.addf %41, %42 : vector<2x32xf32>
    %44 = arith.negf %43 : vector<2x32xf32>
    %45 = math.exp %44 : vector<2x32xf32>
    %cst_15 = arith.constant 1.000000e+00 : f32
    %46 = vector.broadcast %cst_15 : f32 to vector<2x32xf32>
    %47 = arith.addf %46, %45 : vector<2x32xf32>
    %48 = arith.divf %46, %47 : vector<2x32xf32>
    %49 = vector.extract_strided_slice %39 {offsets = [0, 32], sizes = [2, 32], strides = [1, 1]} : vector<2x96xf32> to vector<2x32xf32>
    %50 = vector.extract_strided_slice %40 {offsets = [0, 32], sizes = [2, 32], strides = [1, 1]} : vector<2x96xf32> to vector<2x32xf32>
    %51 = arith.addf %49, %50 : vector<2x32xf32>
    %52 = arith.negf %51 : vector<2x32xf32>
    %53 = math.exp %52 : vector<2x32xf32>
    %cst_16 = arith.constant 1.000000e+00 : f32
    %54 = vector.broadcast %cst_16 : f32 to vector<2x32xf32>
    %55 = arith.addf %54, %53 : vector<2x32xf32>
    %56 = arith.divf %54, %55 : vector<2x32xf32>
    %57 = vector.extract_strided_slice %39 {offsets = [0, 64], sizes = [2, 32], strides = [1, 1]} : vector<2x96xf32> to vector<2x32xf32>
    %58 = vector.extract_strided_slice %40 {offsets = [0, 64], sizes = [2, 32], strides = [1, 1]} : vector<2x96xf32> to vector<2x32xf32>
    %59 = vector.broadcast %7 : vector<1x32xf32> to vector<2x32xf32>
    %60 = arith.addf %58, %59 : vector<2x32xf32>
    %61 = arith.mulf %48, %60 : vector<2x32xf32>
    %62 = arith.addf %57, %61 : vector<2x32xf32>
    %63 = math.tanh %62 : vector<2x32xf32>
    %cst_17 = arith.constant 1.000000e+00 : f32
    %64 = vector.broadcast %cst_17 : f32 to vector<2x32xf32>
    %65 = arith.subf %64, %56 : vector<2x32xf32>
    %66 = arith.mulf %65, %63 : vector<2x32xf32>
    %67 = arith.mulf %56, %38 : vector<2x32xf32>
    %68 = arith.addf %66, %67 : vector<2x32xf32>
    %69 = vector.extract_strided_slice %5 {offsets = [10, 0], sizes = [2, 96], strides = [1, 1]} : vector<16x96xf32> to vector<2x96xf32>
    %cst_18 = arith.constant dense<0.000000e+00> : vector<2x96xf32>
    %70 = tpu.matmul %68, %6, %cst_18 {dimension_numbers = #tpu.dot_dimension_numbers<[1], [0], [0], [1], [0, 0, 1, 1], [], []>} : vector<2x32xf32>, vector<32x96xf32>, vector<2x96xf32> -> vector<2x96xf32>
    %71 = vector.extract_strided_slice %69 {offsets = [0, 0], sizes = [2, 32], strides = [1, 1]} : vector<2x96xf32> to vector<2x32xf32>
    %72 = vector.extract_strided_slice %70 {offsets = [0, 0], sizes = [2, 32], strides = [1, 1]} : vector<2x96xf32> to vector<2x32xf32>
    %73 = arith.addf %71, %72 : vector<2x32xf32>
    %74 = arith.negf %73 : vector<2x32xf32>
    %75 = math.exp %74 : vector<2x32xf32>
    %cst_19 = arith.constant 1.000000e+00 : f32
    %76 = vector.broadcast %cst_19 : f32 to vector<2x32xf32>
    %77 = arith.addf %76, %75 : vector<2x32xf32>
    %78 = arith.divf %76, %77 : vector<2x32xf32>
    %79 = vector.extract_strided_slice %69 {offsets = [0, 32], sizes = [2, 32], strides = [1, 1]} : vector<2x96xf32> to vector<2x32xf32>
    %80 = vector.extract_strided_slice %70 {offsets = [0, 32], sizes = [2, 32], strides = [1, 1]} : vector<2x96xf32> to vector<2x32xf32>
    %81 = arith.addf %79, %80 : vector<2x32xf32>
    %82 = arith.negf %81 : vector<2x32xf32>
    %83 = math.exp %82 : vector<2x32xf32>
    %cst_20 = arith.constant 1.000000e+00 : f32
    %84 = vector.broadcast %cst_20 : f32 to vector<2x32xf32>
    %85 = arith.addf %84, %83 : vector<2x32xf32>
    %86 = arith.divf %84, %85 : vector<2x32xf32>
    %87 = vector.extract_strided_slice %69 {offsets = [0, 64], sizes = [2, 32], strides = [1, 1]} : vector<2x96xf32> to vector<2x32xf32>
    %88 = vector.extract_strided_slice %70 {offsets = [0, 64], sizes = [2, 32], strides = [1, 1]} : vector<2x96xf32> to vector<2x32xf32>
    %89 = vector.broadcast %7 : vector<1x32xf32> to vector<2x32xf32>
    %90 = arith.addf %88, %89 : vector<2x32xf32>
    %91 = arith.mulf %78, %90 : vector<2x32xf32>
    %92 = arith.addf %87, %91 : vector<2x32xf32>
    %93 = math.tanh %92 : vector<2x32xf32>
    %cst_21 = arith.constant 1.000000e+00 : f32
    %94 = vector.broadcast %cst_21 : f32 to vector<2x32xf32>
    %95 = arith.subf %94, %86 : vector<2x32xf32>
    %96 = arith.mulf %95, %93 : vector<2x32xf32>
    %97 = arith.mulf %86, %68 : vector<2x32xf32>
    %98 = arith.addf %96, %97 : vector<2x32xf32>
    %99 = vector.extract_strided_slice %5 {offsets = [8, 0], sizes = [2, 96], strides = [1, 1]} : vector<16x96xf32> to vector<2x96xf32>
    %cst_22 = arith.constant dense<0.000000e+00> : vector<2x96xf32>
    %100 = tpu.matmul %98, %6, %cst_22 {dimension_numbers = #tpu.dot_dimension_numbers<[1], [0], [0], [1], [0, 0, 1, 1], [], []>} : vector<2x32xf32>, vector<32x96xf32>, vector<2x96xf32> -> vector<2x96xf32>
    %101 = vector.extract_strided_slice %99 {offsets = [0, 0], sizes = [2, 32], strides = [1, 1]} : vector<2x96xf32> to vector<2x32xf32>
    %102 = vector.extract_strided_slice %100 {offsets = [0, 0], sizes = [2, 32], strides = [1, 1]} : vector<2x96xf32> to vector<2x32xf32>
    %103 = arith.addf %101, %102 : vector<2x32xf32>
    %104 = arith.negf %103 : vector<2x32xf32>
    %105 = math.exp %104 : vector<2x32xf32>
    %cst_23 = arith.constant 1.000000e+00 : f32
    %106 = vector.broadcast %cst_23 : f32 to vector<2x32xf32>
    %107 = arith.addf %106, %105 : vector<2x32xf32>
    %108 = arith.divf %106, %107 : vector<2x32xf32>
    %109 = vector.extract_strided_slice %99 {offsets = [0, 32], sizes = [2, 32], strides = [1, 1]} : vector<2x96xf32> to vector<2x32xf32>
    %110 = vector.extract_strided_slice %100 {offsets = [0, 32], sizes = [2, 32], strides = [1, 1]} : vector<2x96xf32> to vector<2x32xf32>
    %111 = arith.addf %109, %110 : vector<2x32xf32>
    %112 = arith.negf %111 : vector<2x32xf32>
    %113 = math.exp %112 : vector<2x32xf32>
    %cst_24 = arith.constant 1.000000e+00 : f32
    %114 = vector.broadcast %cst_24 : f32 to vector<2x32xf32>
    %115 = arith.addf %114, %113 : vector<2x32xf32>
    %116 = arith.divf %114, %115 : vector<2x32xf32>
    %117 = vector.extract_strided_slice %99 {offsets = [0, 64], sizes = [2, 32], strides = [1, 1]} : vector<2x96xf32> to vector<2x32xf32>
    %118 = vector.extract_strided_slice %100 {offsets = [0, 64], sizes = [2, 32], strides = [1, 1]} : vector<2x96xf32> to vector<2x32xf32>
    %119 = vector.broadcast %7 : vector<1x32xf32> to vector<2x32xf32>
    %120 = arith.addf %118, %119 : vector<2x32xf32>
    %121 = arith.mulf %108, %120 : vector<2x32xf32>
    %122 = arith.addf %117, %121 : vector<2x32xf32>
    %123 = math.tanh %122 : vector<2x32xf32>
    %cst_25 = arith.constant 1.000000e+00 : f32
    %124 = vector.broadcast %cst_25 : f32 to vector<2x32xf32>
    %125 = arith.subf %124, %116 : vector<2x32xf32>
    %126 = arith.mulf %125, %123 : vector<2x32xf32>
    %127 = arith.mulf %116, %98 : vector<2x32xf32>
    %128 = arith.addf %126, %127 : vector<2x32xf32>
    %129 = vector.extract_strided_slice %5 {offsets = [6, 0], sizes = [2, 96], strides = [1, 1]} : vector<16x96xf32> to vector<2x96xf32>
    %cst_26 = arith.constant dense<0.000000e+00> : vector<2x96xf32>
    %130 = tpu.matmul %128, %6, %cst_26 {dimension_numbers = #tpu.dot_dimension_numbers<[1], [0], [0], [1], [0, 0, 1, 1], [], []>} : vector<2x32xf32>, vector<32x96xf32>, vector<2x96xf32> -> vector<2x96xf32>
    %131 = vector.extract_strided_slice %129 {offsets = [0, 0], sizes = [2, 32], strides = [1, 1]} : vector<2x96xf32> to vector<2x32xf32>
    %132 = vector.extract_strided_slice %130 {offsets = [0, 0], sizes = [2, 32], strides = [1, 1]} : vector<2x96xf32> to vector<2x32xf32>
    %133 = arith.addf %131, %132 : vector<2x32xf32>
    %134 = arith.negf %133 : vector<2x32xf32>
    %135 = math.exp %134 : vector<2x32xf32>
    %cst_27 = arith.constant 1.000000e+00 : f32
    %136 = vector.broadcast %cst_27 : f32 to vector<2x32xf32>
    %137 = arith.addf %136, %135 : vector<2x32xf32>
    %138 = arith.divf %136, %137 : vector<2x32xf32>
    %139 = vector.extract_strided_slice %129 {offsets = [0, 32], sizes = [2, 32], strides = [1, 1]} : vector<2x96xf32> to vector<2x32xf32>
    %140 = vector.extract_strided_slice %130 {offsets = [0, 32], sizes = [2, 32], strides = [1, 1]} : vector<2x96xf32> to vector<2x32xf32>
    %141 = arith.addf %139, %140 : vector<2x32xf32>
    %142 = arith.negf %141 : vector<2x32xf32>
    %143 = math.exp %142 : vector<2x32xf32>
    %cst_28 = arith.constant 1.000000e+00 : f32
    %144 = vector.broadcast %cst_28 : f32 to vector<2x32xf32>
    %145 = arith.addf %144, %143 : vector<2x32xf32>
    %146 = arith.divf %144, %145 : vector<2x32xf32>
    %147 = vector.extract_strided_slice %129 {offsets = [0, 64], sizes = [2, 32], strides = [1, 1]} : vector<2x96xf32> to vector<2x32xf32>
    %148 = vector.extract_strided_slice %130 {offsets = [0, 64], sizes = [2, 32], strides = [1, 1]} : vector<2x96xf32> to vector<2x32xf32>
    %149 = vector.broadcast %7 : vector<1x32xf32> to vector<2x32xf32>
    %150 = arith.addf %148, %149 : vector<2x32xf32>
    %151 = arith.mulf %138, %150 : vector<2x32xf32>
    %152 = arith.addf %147, %151 : vector<2x32xf32>
    %153 = math.tanh %152 : vector<2x32xf32>
    %cst_29 = arith.constant 1.000000e+00 : f32
    %154 = vector.broadcast %cst_29 : f32 to vector<2x32xf32>
    %155 = arith.subf %154, %146 : vector<2x32xf32>
    %156 = arith.mulf %155, %153 : vector<2x32xf32>
    %157 = arith.mulf %146, %128 : vector<2x32xf32>
    %158 = arith.addf %156, %157 : vector<2x32xf32>
    %159 = vector.extract_strided_slice %5 {offsets = [4, 0], sizes = [2, 96], strides = [1, 1]} : vector<16x96xf32> to vector<2x96xf32>
    %cst_30 = arith.constant dense<0.000000e+00> : vector<2x96xf32>
    %160 = tpu.matmul %158, %6, %cst_30 {dimension_numbers = #tpu.dot_dimension_numbers<[1], [0], [0], [1], [0, 0, 1, 1], [], []>} : vector<2x32xf32>, vector<32x96xf32>, vector<2x96xf32> -> vector<2x96xf32>
    %161 = vector.extract_strided_slice %159 {offsets = [0, 0], sizes = [2, 32], strides = [1, 1]} : vector<2x96xf32> to vector<2x32xf32>
    %162 = vector.extract_strided_slice %160 {offsets = [0, 0], sizes = [2, 32], strides = [1, 1]} : vector<2x96xf32> to vector<2x32xf32>
    %163 = arith.addf %161, %162 : vector<2x32xf32>
    %164 = arith.negf %163 : vector<2x32xf32>
    %165 = math.exp %164 : vector<2x32xf32>
    %cst_31 = arith.constant 1.000000e+00 : f32
    %166 = vector.broadcast %cst_31 : f32 to vector<2x32xf32>
    %167 = arith.addf %166, %165 : vector<2x32xf32>
    %168 = arith.divf %166, %167 : vector<2x32xf32>
    %169 = vector.extract_strided_slice %159 {offsets = [0, 32], sizes = [2, 32], strides = [1, 1]} : vector<2x96xf32> to vector<2x32xf32>
    %170 = vector.extract_strided_slice %160 {offsets = [0, 32], sizes = [2, 32], strides = [1, 1]} : vector<2x96xf32> to vector<2x32xf32>
    %171 = arith.addf %169, %170 : vector<2x32xf32>
    %172 = arith.negf %171 : vector<2x32xf32>
    %173 = math.exp %172 : vector<2x32xf32>
    %cst_32 = arith.constant 1.000000e+00 : f32
    %174 = vector.broadcast %cst_32 : f32 to vector<2x32xf32>
    %175 = arith.addf %174, %173 : vector<2x32xf32>
    %176 = arith.divf %174, %175 : vector<2x32xf32>
    %177 = vector.extract_strided_slice %159 {offsets = [0, 64], sizes = [2, 32], strides = [1, 1]} : vector<2x96xf32> to vector<2x32xf32>
    %178 = vector.extract_strided_slice %160 {offsets = [0, 64], sizes = [2, 32], strides = [1, 1]} : vector<2x96xf32> to vector<2x32xf32>
    %179 = vector.broadcast %7 : vector<1x32xf32> to vector<2x32xf32>
    %180 = arith.addf %178, %179 : vector<2x32xf32>
    %181 = arith.mulf %168, %180 : vector<2x32xf32>
    %182 = arith.addf %177, %181 : vector<2x32xf32>
    %183 = math.tanh %182 : vector<2x32xf32>
    %cst_33 = arith.constant 1.000000e+00 : f32
    %184 = vector.broadcast %cst_33 : f32 to vector<2x32xf32>
    %185 = arith.subf %184, %176 : vector<2x32xf32>
    %186 = arith.mulf %185, %183 : vector<2x32xf32>
    %187 = arith.mulf %176, %158 : vector<2x32xf32>
    %188 = arith.addf %186, %187 : vector<2x32xf32>
    %189 = vector.extract_strided_slice %5 {offsets = [2, 0], sizes = [2, 96], strides = [1, 1]} : vector<16x96xf32> to vector<2x96xf32>
    %cst_34 = arith.constant dense<0.000000e+00> : vector<2x96xf32>
    %190 = tpu.matmul %188, %6, %cst_34 {dimension_numbers = #tpu.dot_dimension_numbers<[1], [0], [0], [1], [0, 0, 1, 1], [], []>} : vector<2x32xf32>, vector<32x96xf32>, vector<2x96xf32> -> vector<2x96xf32>
    %191 = vector.extract_strided_slice %189 {offsets = [0, 0], sizes = [2, 32], strides = [1, 1]} : vector<2x96xf32> to vector<2x32xf32>
    %192 = vector.extract_strided_slice %190 {offsets = [0, 0], sizes = [2, 32], strides = [1, 1]} : vector<2x96xf32> to vector<2x32xf32>
    %193 = arith.addf %191, %192 : vector<2x32xf32>
    %194 = arith.negf %193 : vector<2x32xf32>
    %195 = math.exp %194 : vector<2x32xf32>
    %cst_35 = arith.constant 1.000000e+00 : f32
    %196 = vector.broadcast %cst_35 : f32 to vector<2x32xf32>
    %197 = arith.addf %196, %195 : vector<2x32xf32>
    %198 = arith.divf %196, %197 : vector<2x32xf32>
    %199 = vector.extract_strided_slice %189 {offsets = [0, 32], sizes = [2, 32], strides = [1, 1]} : vector<2x96xf32> to vector<2x32xf32>
    %200 = vector.extract_strided_slice %190 {offsets = [0, 32], sizes = [2, 32], strides = [1, 1]} : vector<2x96xf32> to vector<2x32xf32>
    %201 = arith.addf %199, %200 : vector<2x32xf32>
    %202 = arith.negf %201 : vector<2x32xf32>
    %203 = math.exp %202 : vector<2x32xf32>
    %cst_36 = arith.constant 1.000000e+00 : f32
    %204 = vector.broadcast %cst_36 : f32 to vector<2x32xf32>
    %205 = arith.addf %204, %203 : vector<2x32xf32>
    %206 = arith.divf %204, %205 : vector<2x32xf32>
    %207 = vector.extract_strided_slice %189 {offsets = [0, 64], sizes = [2, 32], strides = [1, 1]} : vector<2x96xf32> to vector<2x32xf32>
    %208 = vector.extract_strided_slice %190 {offsets = [0, 64], sizes = [2, 32], strides = [1, 1]} : vector<2x96xf32> to vector<2x32xf32>
    %209 = vector.broadcast %7 : vector<1x32xf32> to vector<2x32xf32>
    %210 = arith.addf %208, %209 : vector<2x32xf32>
    %211 = arith.mulf %198, %210 : vector<2x32xf32>
    %212 = arith.addf %207, %211 : vector<2x32xf32>
    %213 = math.tanh %212 : vector<2x32xf32>
    %cst_37 = arith.constant 1.000000e+00 : f32
    %214 = vector.broadcast %cst_37 : f32 to vector<2x32xf32>
    %215 = arith.subf %214, %206 : vector<2x32xf32>
    %216 = arith.mulf %215, %213 : vector<2x32xf32>
    %217 = arith.mulf %206, %188 : vector<2x32xf32>
    %218 = arith.addf %216, %217 : vector<2x32xf32>
    %219 = vector.extract_strided_slice %5 {offsets = [0, 0], sizes = [2, 96], strides = [1, 1]} : vector<16x96xf32> to vector<2x96xf32>
    %cst_38 = arith.constant dense<0.000000e+00> : vector<2x96xf32>
    %220 = tpu.matmul %218, %6, %cst_38 {dimension_numbers = #tpu.dot_dimension_numbers<[1], [0], [0], [1], [0, 0, 1, 1], [], []>} : vector<2x32xf32>, vector<32x96xf32>, vector<2x96xf32> -> vector<2x96xf32>
    %221 = vector.extract_strided_slice %219 {offsets = [0, 0], sizes = [2, 32], strides = [1, 1]} : vector<2x96xf32> to vector<2x32xf32>
    %222 = vector.extract_strided_slice %220 {offsets = [0, 0], sizes = [2, 32], strides = [1, 1]} : vector<2x96xf32> to vector<2x32xf32>
    %223 = arith.addf %221, %222 : vector<2x32xf32>
    %224 = arith.negf %223 : vector<2x32xf32>
    %225 = math.exp %224 : vector<2x32xf32>
    %cst_39 = arith.constant 1.000000e+00 : f32
    %226 = vector.broadcast %cst_39 : f32 to vector<2x32xf32>
    %227 = arith.addf %226, %225 : vector<2x32xf32>
    %228 = arith.divf %226, %227 : vector<2x32xf32>
    %229 = vector.extract_strided_slice %219 {offsets = [0, 32], sizes = [2, 32], strides = [1, 1]} : vector<2x96xf32> to vector<2x32xf32>
    %230 = vector.extract_strided_slice %220 {offsets = [0, 32], sizes = [2, 32], strides = [1, 1]} : vector<2x96xf32> to vector<2x32xf32>
    %231 = arith.addf %229, %230 : vector<2x32xf32>
    %232 = arith.negf %231 : vector<2x32xf32>
    %233 = math.exp %232 : vector<2x32xf32>
    %cst_40 = arith.constant 1.000000e+00 : f32
    %234 = vector.broadcast %cst_40 : f32 to vector<2x32xf32>
    %235 = arith.addf %234, %233 : vector<2x32xf32>
    %236 = arith.divf %234, %235 : vector<2x32xf32>
    %237 = vector.extract_strided_slice %219 {offsets = [0, 64], sizes = [2, 32], strides = [1, 1]} : vector<2x96xf32> to vector<2x32xf32>
    %238 = vector.extract_strided_slice %220 {offsets = [0, 64], sizes = [2, 32], strides = [1, 1]} : vector<2x96xf32> to vector<2x32xf32>
    %239 = vector.broadcast %7 : vector<1x32xf32> to vector<2x32xf32>
    %240 = arith.addf %238, %239 : vector<2x32xf32>
    %241 = arith.mulf %228, %240 : vector<2x32xf32>
    %242 = arith.addf %237, %241 : vector<2x32xf32>
    %243 = math.tanh %242 : vector<2x32xf32>
    %cst_41 = arith.constant 1.000000e+00 : f32
    %244 = vector.broadcast %cst_41 : f32 to vector<2x32xf32>
    %245 = arith.subf %244, %236 : vector<2x32xf32>
    %246 = arith.mulf %245, %243 : vector<2x32xf32>
    %247 = arith.mulf %236, %218 : vector<2x32xf32>
    %248 = arith.addf %246, %247 : vector<2x32xf32>
    %c0_42 = arith.constant 0 : index
    %c0_43 = arith.constant 0 : index
    %249 = vector.load %arg7[%c0_42, %c0_43] : memref<32x16xf32, #tpu.memory_space<vmem>>, vector<32x16xf32>
    %cst_44 = arith.constant dense<0.000000e+00> : vector<2x16xf32>
    %250 = tpu.matmul %248, %249, %cst_44 {dimension_numbers = #tpu.dot_dimension_numbers<[1], [0], [0], [1], [0, 0, 1, 1], [], []>} : vector<2x32xf32>, vector<32x16xf32>, vector<2x16xf32> -> vector<2x16xf32>
    %c0_45 = arith.constant 0 : index
    %c0_46 = arith.constant 0 : index
    %251 = vector.load %arg8[%c0_45, %c0_46] : memref<1x16xf32, #tpu.memory_space<vmem>>, vector<1x16xf32>
    %252 = vector.broadcast %251 : vector<1x16xf32> to vector<2x16xf32>
    %253 = arith.addf %250, %252 : vector<2x16xf32>
    %254 = vector.extract_strided_slice %253 {offsets = [0, 0], sizes = [2, 8], strides = [1, 1]} : vector<2x16xf32> to vector<2x8xf32>
    %255 = vector.extract_strided_slice %253 {offsets = [0, 8], sizes = [2, 8], strides = [1, 1]} : vector<2x16xf32> to vector<2x8xf32>
    %c0_47 = arith.constant 0 : index
    %c0_48 = arith.constant 0 : index
    %256 = vector.load %arg21[%c0_47, %c0_48] : memref<2x8xf32, #tpu.memory_space<vmem>>, vector<2x8xf32>
    tpu.vector_store %arg21[%c0_47, %c0_48], %254 {strides = array<i32>} : memref<2x8xf32, #tpu.memory_space<vmem>>, vector<2x8xf32>,
    %c0_49 = arith.constant 0 : index
    %c0_50 = arith.constant 0 : index
    %257 = vector.load %arg22[%c0_49, %c0_50] : memref<2x8xf32, #tpu.memory_space<vmem>>, vector<2x8xf32>
    tpu.vector_store %arg22[%c0_49, %c0_50], %255 {strides = array<i32>} : memref<2x8xf32, #tpu.memory_space<vmem>>, vector<2x8xf32>,
    %c0_51 = arith.constant 0 : index
    %c0_52 = arith.constant 0 : index
    %258 = vector.load %arg1[%c0_51, %c0_52] : memref<2x8xf32, #tpu.memory_space<vmem>>, vector<2x8xf32>
    %cst_53 = arith.constant 5.000000e-01 : f32
    %259 = vector.broadcast %cst_53 : f32 to vector<2x8xf32>
    %260 = arith.mulf %259, %255 : vector<2x8xf32>
    %261 = math.exp %260 : vector<2x8xf32>
    %262 = arith.mulf %258, %261 : vector<2x8xf32>
    %263 = arith.addf %254, %262 : vector<2x8xf32>
    %c0_54 = arith.constant 0 : index
    %c0_55 = arith.constant 0 : index
    %264 = vector.load %arg20[%c0_54, %c0_55] : memref<2x8xf32, #tpu.memory_space<vmem>>, vector<2x8xf32>
    tpu.vector_store %arg20[%c0_54, %c0_55], %263 {strides = array<i32>} : memref<2x8xf32, #tpu.memory_space<vmem>>, vector<2x8xf32>,
    %c0_56 = arith.constant 0 : index
    %c0_57 = arith.constant 0 : index
    %265 = vector.load %arg9[%c0_56, %c0_57] : memref<8x32xf32, #tpu.memory_space<vmem>>, vector<8x32xf32>
    %c0_58 = arith.constant 0 : index
    %c0_59 = arith.constant 0 : index
    %266 = vector.load %arg10[%c0_58, %c0_59] : memref<1x32xf32, #tpu.memory_space<vmem>>, vector<1x32xf32>
    %c0_60 = arith.constant 0 : index
    %c0_61 = arith.constant 0 : index
    %267 = vector.load %arg11[%c0_60, %c0_61] : memref<32x32xf32, #tpu.memory_space<vmem>>, vector<32x32xf32>
    %c0_62 = arith.constant 0 : index
    %c0_63 = arith.constant 0 : index
    %268 = vector.load %arg12[%c0_62, %c0_63] : memref<1x32xf32, #tpu.memory_space<vmem>>, vector<1x32xf32>
    %c0_64 = arith.constant 0 : index
    %c0_65 = arith.constant 0 : index
    %269 = vector.load %arg13[%c0_64, %c0_65] : memref<32x8xf32, #tpu.memory_space<vmem>>, vector<32x8xf32>
    %c0_66 = arith.constant 0 : index
    %c0_67 = arith.constant 0 : index
    %270 = vector.load %arg14[%c0_66, %c0_67] : memref<1x8xf32, #tpu.memory_space<vmem>>, vector<1x8xf32>
    %c0_68 = arith.constant 0 : index
    %c0_69 = arith.constant 0 : index
    %271 = vector.load %arg23[%c0_68, %c0_69] : memref<16x8xf32, #tpu.memory_space<vmem>>, vector<2x8xf32>
    tpu.vector_store %arg23[%c0_68, %c0_69], %263 {strides = array<i32>} : memref<16x8xf32, #tpu.memory_space<vmem>>, vector<2x8xf32>,
    %c1 = arith.constant 1 : index
    %272 = memref.load %arg2[%c1] : memref<8xf32, #tpu.memory_space<smem>>
    %c0_70 = arith.constant 0 : index
    %273 = memref.load %arg2[%c0_70] : memref<8xf32, #tpu.memory_space<smem>>
    %274 = arith.subf %272, %273 : f32
    %cst_71 = arith.constant dense<0.000000e+00> : vector<2x32xf32>
    %275 = tpu.matmul %263, %265, %cst_71 {dimension_numbers = #tpu.dot_dimension_numbers<[1], [0], [0], [1], [0, 0, 1, 1], [], []>} : vector<2x8xf32>, vector<8x32xf32>, vector<2x32xf32> -> vector<2x32xf32>
    %276 = vector.broadcast %266 : vector<1x32xf32> to vector<2x32xf32>
    %277 = arith.addf %275, %276 : vector<2x32xf32>
    %cst_72 = arith.constant 0.000000e+00 : f32
    %278 = vector.broadcast %cst_72 : f32 to vector<2x32xf32>
    %279 = arith.cmpf ogt, %277, %278 : vector<2x32xf32>
    %cst_73 = arith.constant 0.000000e+00 : f32
    %280 = vector.broadcast %cst_73 : f32 to vector<2x32xf32>
    %281 = arith.minimumf %277, %280 : vector<2x32xf32>
    %282 = math.exp %281 : vector<2x32xf32>
    %cst_74 = arith.constant 1.000000e+00 : f32
    %283 = vector.broadcast %cst_74 : f32 to vector<2x32xf32>
    %284 = arith.subf %282, %283 : vector<2x32xf32>
    %285 = arith.select %279, %277, %284 : vector<2x32xi1>, vector<2x32xf32>
    %cst_75 = arith.constant dense<0.000000e+00> : vector<2x32xf32>
    %286 = tpu.matmul %285, %267, %cst_75 {dimension_numbers = #tpu.dot_dimension_numbers<[1], [0], [0], [1], [0, 0, 1, 1], [], []>} : vector<2x32xf32>, vector<32x32xf32>, vector<2x32xf32> -> vector<2x32xf32>
    %287 = vector.broadcast %268 : vector<1x32xf32> to vector<2x32xf32>
    %288 = arith.addf %286, %287 : vector<2x32xf32>
    %cst_76 = arith.constant 0.000000e+00 : f32
    %289 = vector.broadcast %cst_76 : f32 to vector<2x32xf32>
    %290 = arith.cmpf ogt, %288, %289 : vector<2x32xf32>
    %cst_77 = arith.constant 0.000000e+00 : f32
    %291 = vector.broadcast %cst_77 : f32 to vector<2x32xf32>
    %292 = arith.minimumf %288, %291 : vector<2x32xf32>
    %293 = math.exp %292 : vector<2x32xf32>
    %cst_78 = arith.constant 1.000000e+00 : f32
    %294 = vector.broadcast %cst_78 : f32 to vector<2x32xf32>
    %295 = arith.subf %293, %294 : vector<2x32xf32>
    %296 = arith.select %290, %288, %295 : vector<2x32xi1>, vector<2x32xf32>
    %cst_79 = arith.constant dense<0.000000e+00> : vector<2x8xf32>
    %297 = tpu.matmul %296, %269, %cst_79 {dimension_numbers = #tpu.dot_dimension_numbers<[1], [0], [0], [1], [0, 0, 1, 1], [], []>} : vector<2x32xf32>, vector<32x8xf32>, vector<2x8xf32> -> vector<2x8xf32>
    %298 = vector.broadcast %270 : vector<1x8xf32> to vector<2x8xf32>
    %299 = arith.addf %297, %298 : vector<2x8xf32>
    %300 = vector.broadcast %274 : f32 to vector<2x8xf32>
    %301 = arith.mulf %300, %299 : vector<2x8xf32>
    %302 = arith.addf %263, %301 : vector<2x8xf32>
    %c2 = arith.constant 2 : index
    %c0_80 = arith.constant 0 : index
    %303 = vector.load %arg23[%c2, %c0_80] : memref<16x8xf32, #tpu.memory_space<vmem>>, vector<2x8xf32>
    tpu.vector_store %arg23[%c2, %c0_80], %302 {strides = array<i32>} : memref<16x8xf32, #tpu.memory_space<vmem>>, vector<2x8xf32>,
    %c2_81 = arith.constant 2 : index
    %304 = memref.load %arg2[%c2_81] : memref<8xf32, #tpu.memory_space<smem>>
    %c1_82 = arith.constant 1 : index
    %305 = memref.load %arg2[%c1_82] : memref<8xf32, #tpu.memory_space<smem>>
    %306 = arith.subf %304, %305 : f32
    %cst_83 = arith.constant dense<0.000000e+00> : vector<2x32xf32>
    %307 = tpu.matmul %302, %265, %cst_83 {dimension_numbers = #tpu.dot_dimension_numbers<[1], [0], [0], [1], [0, 0, 1, 1], [], []>} : vector<2x8xf32>, vector<8x32xf32>, vector<2x32xf32> -> vector<2x32xf32>
    %308 = vector.broadcast %266 : vector<1x32xf32> to vector<2x32xf32>
    %309 = arith.addf %307, %308 : vector<2x32xf32>
    %cst_84 = arith.constant 0.000000e+00 : f32
    %310 = vector.broadcast %cst_84 : f32 to vector<2x32xf32>
    %311 = arith.cmpf ogt, %309, %310 : vector<2x32xf32>
    %cst_85 = arith.constant 0.000000e+00 : f32
    %312 = vector.broadcast %cst_85 : f32 to vector<2x32xf32>
    %313 = arith.minimumf %309, %312 : vector<2x32xf32>
    %314 = math.exp %313 : vector<2x32xf32>
    %cst_86 = arith.constant 1.000000e+00 : f32
    %315 = vector.broadcast %cst_86 : f32 to vector<2x32xf32>
    %316 = arith.subf %314, %315 : vector<2x32xf32>
    %317 = arith.select %311, %309, %316 : vector<2x32xi1>, vector<2x32xf32>
    %cst_87 = arith.constant dense<0.000000e+00> : vector<2x32xf32>
    %318 = tpu.matmul %317, %267, %cst_87 {dimension_numbers = #tpu.dot_dimension_numbers<[1], [0], [0], [1], [0, 0, 1, 1], [], []>} : vector<2x32xf32>, vector<32x32xf32>, vector<2x32xf32> -> vector<2x32xf32>
    %319 = vector.broadcast %268 : vector<1x32xf32> to vector<2x32xf32>
    %320 = arith.addf %318, %319 : vector<2x32xf32>
    %cst_88 = arith.constant 0.000000e+00 : f32
    %321 = vector.broadcast %cst_88 : f32 to vector<2x32xf32>
    %322 = arith.cmpf ogt, %320, %321 : vector<2x32xf32>
    %cst_89 = arith.constant 0.000000e+00 : f32
    %323 = vector.broadcast %cst_89 : f32 to vector<2x32xf32>
    %324 = arith.minimumf %320, %323 : vector<2x32xf32>
    %325 = math.exp %324 : vector<2x32xf32>
    %cst_90 = arith.constant 1.000000e+00 : f32
    %326 = vector.broadcast %cst_90 : f32 to vector<2x32xf32>
    %327 = arith.subf %325, %326 : vector<2x32xf32>
    %328 = arith.select %322, %320, %327 : vector<2x32xi1>, vector<2x32xf32>
    %cst_91 = arith.constant dense<0.000000e+00> : vector<2x8xf32>
    %329 = tpu.matmul %328, %269, %cst_91 {dimension_numbers = #tpu.dot_dimension_numbers<[1], [0], [0], [1], [0, 0, 1, 1], [], []>} : vector<2x32xf32>, vector<32x8xf32>, vector<2x8xf32> -> vector<2x8xf32>
    %330 = vector.broadcast %270 : vector<1x8xf32> to vector<2x8xf32>
    %331 = arith.addf %329, %330 : vector<2x8xf32>
    %332 = vector.broadcast %306 : f32 to vector<2x8xf32>
    %333 = arith.mulf %332, %331 : vector<2x8xf32>
    %334 = arith.addf %302, %333 : vector<2x8xf32>
    %c4 = arith.constant 4 : index
    %c0_92 = arith.constant 0 : index
    %335 = vector.load %arg23[%c4, %c0_92] : memref<16x8xf32, #tpu.memory_space<vmem>>, vector<2x8xf32>
    tpu.vector_store %arg23[%c4, %c0_92], %334 {strides = array<i32>} : memref<16x8xf32, #tpu.memory_space<vmem>>, vector<2x8xf32>,
    %c3 = arith.constant 3 : index
    %336 = memref.load %arg2[%c3] : memref<8xf32, #tpu.memory_space<smem>>
    %c2_93 = arith.constant 2 : index
    %337 = memref.load %arg2[%c2_93] : memref<8xf32, #tpu.memory_space<smem>>
    %338 = arith.subf %336, %337 : f32
    %cst_94 = arith.constant dense<0.000000e+00> : vector<2x32xf32>
    %339 = tpu.matmul %334, %265, %cst_94 {dimension_numbers = #tpu.dot_dimension_numbers<[1], [0], [0], [1], [0, 0, 1, 1], [], []>} : vector<2x8xf32>, vector<8x32xf32>, vector<2x32xf32> -> vector<2x32xf32>
    %340 = vector.broadcast %266 : vector<1x32xf32> to vector<2x32xf32>
    %341 = arith.addf %339, %340 : vector<2x32xf32>
    %cst_95 = arith.constant 0.000000e+00 : f32
    %342 = vector.broadcast %cst_95 : f32 to vector<2x32xf32>
    %343 = arith.cmpf ogt, %341, %342 : vector<2x32xf32>
    %cst_96 = arith.constant 0.000000e+00 : f32
    %344 = vector.broadcast %cst_96 : f32 to vector<2x32xf32>
    %345 = arith.minimumf %341, %344 : vector<2x32xf32>
    %346 = math.exp %345 : vector<2x32xf32>
    %cst_97 = arith.constant 1.000000e+00 : f32
    %347 = vector.broadcast %cst_97 : f32 to vector<2x32xf32>
    %348 = arith.subf %346, %347 : vector<2x32xf32>
    %349 = arith.select %343, %341, %348 : vector<2x32xi1>, vector<2x32xf32>
    %cst_98 = arith.constant dense<0.000000e+00> : vector<2x32xf32>
    %350 = tpu.matmul %349, %267, %cst_98 {dimension_numbers = #tpu.dot_dimension_numbers<[1], [0], [0], [1], [0, 0, 1, 1], [], []>} : vector<2x32xf32>, vector<32x32xf32>, vector<2x32xf32> -> vector<2x32xf32>
    %351 = vector.broadcast %268 : vector<1x32xf32> to vector<2x32xf32>
    %352 = arith.addf %350, %351 : vector<2x32xf32>
    %cst_99 = arith.constant 0.000000e+00 : f32
    %353 = vector.broadcast %cst_99 : f32 to vector<2x32xf32>
    %354 = arith.cmpf ogt, %352, %353 : vector<2x32xf32>
    %cst_100 = arith.constant 0.000000e+00 : f32
    %355 = vector.broadcast %cst_100 : f32 to vector<2x32xf32>
    %356 = arith.minimumf %352, %355 : vector<2x32xf32>
    %357 = math.exp %356 : vector<2x32xf32>
    %cst_101 = arith.constant 1.000000e+00 : f32
    %358 = vector.broadcast %cst_101 : f32 to vector<2x32xf32>
    %359 = arith.subf %357, %358 : vector<2x32xf32>
    %360 = arith.select %354, %352, %359 : vector<2x32xi1>, vector<2x32xf32>
    %cst_102 = arith.constant dense<0.000000e+00> : vector<2x8xf32>
    %361 = tpu.matmul %360, %269, %cst_102 {dimension_numbers = #tpu.dot_dimension_numbers<[1], [0], [0], [1], [0, 0, 1, 1], [], []>} : vector<2x32xf32>, vector<32x8xf32>, vector<2x8xf32> -> vector<2x8xf32>
    %362 = vector.broadcast %270 : vector<1x8xf32> to vector<2x8xf32>
    %363 = arith.addf %361, %362 : vector<2x8xf32>
    %364 = vector.broadcast %338 : f32 to vector<2x8xf32>
    %365 = arith.mulf %364, %363 : vector<2x8xf32>
    %366 = arith.addf %334, %365 : vector<2x8xf32>
    %c6 = arith.constant 6 : index
    %c0_103 = arith.constant 0 : index
    %367 = vector.load %arg23[%c6, %c0_103] : memref<16x8xf32, #tpu.memory_space<vmem>>, vector<2x8xf32>
    tpu.vector_store %arg23[%c6, %c0_103], %366 {strides = array<i32>} : memref<16x8xf32, #tpu.memory_space<vmem>>, vector<2x8xf32>,
    %c4_104 = arith.constant 4 : index
    %368 = memref.load %arg2[%c4_104] : memref<8xf32, #tpu.memory_space<smem>>
    %c3_105 = arith.constant 3 : index
    %369 = memref.load %arg2[%c3_105] : memref<8xf32, #tpu.memory_space<smem>>
    %370 = arith.subf %368, %369 : f32
    %cst_106 = arith.constant dense<0.000000e+00> : vector<2x32xf32>
    %371 = tpu.matmul %366, %265, %cst_106 {dimension_numbers = #tpu.dot_dimension_numbers<[1], [0], [0], [1], [0, 0, 1, 1], [], []>} : vector<2x8xf32>, vector<8x32xf32>, vector<2x32xf32> -> vector<2x32xf32>
    %372 = vector.broadcast %266 : vector<1x32xf32> to vector<2x32xf32>
    %373 = arith.addf %371, %372 : vector<2x32xf32>
    %cst_107 = arith.constant 0.000000e+00 : f32
    %374 = vector.broadcast %cst_107 : f32 to vector<2x32xf32>
    %375 = arith.cmpf ogt, %373, %374 : vector<2x32xf32>
    %cst_108 = arith.constant 0.000000e+00 : f32
    %376 = vector.broadcast %cst_108 : f32 to vector<2x32xf32>
    %377 = arith.minimumf %373, %376 : vector<2x32xf32>
    %378 = math.exp %377 : vector<2x32xf32>
    %cst_109 = arith.constant 1.000000e+00 : f32
    %379 = vector.broadcast %cst_109 : f32 to vector<2x32xf32>
    %380 = arith.subf %378, %379 : vector<2x32xf32>
    %381 = arith.select %375, %373, %380 : vector<2x32xi1>, vector<2x32xf32>
    %cst_110 = arith.constant dense<0.000000e+00> : vector<2x32xf32>
    %382 = tpu.matmul %381, %267, %cst_110 {dimension_numbers = #tpu.dot_dimension_numbers<[1], [0], [0], [1], [0, 0, 1, 1], [], []>} : vector<2x32xf32>, vector<32x32xf32>, vector<2x32xf32> -> vector<2x32xf32>
    %383 = vector.broadcast %268 : vector<1x32xf32> to vector<2x32xf32>
    %384 = arith.addf %382, %383 : vector<2x32xf32>
    %cst_111 = arith.constant 0.000000e+00 : f32
    %385 = vector.broadcast %cst_111 : f32 to vector<2x32xf32>
    %386 = arith.cmpf ogt, %384, %385 : vector<2x32xf32>
    %cst_112 = arith.constant 0.000000e+00 : f32
    %387 = vector.broadcast %cst_112 : f32 to vector<2x32xf32>
    %388 = arith.minimumf %384, %387 : vector<2x32xf32>
    %389 = math.exp %388 : vector<2x32xf32>
    %cst_113 = arith.constant 1.000000e+00 : f32
    %390 = vector.broadcast %cst_113 : f32 to vector<2x32xf32>
    %391 = arith.subf %389, %390 : vector<2x32xf32>
    %392 = arith.select %386, %384, %391 : vector<2x32xi1>, vector<2x32xf32>
    %cst_114 = arith.constant dense<0.000000e+00> : vector<2x8xf32>
    %393 = tpu.matmul %392, %269, %cst_114 {dimension_numbers = #tpu.dot_dimension_numbers<[1], [0], [0], [1], [0, 0, 1, 1], [], []>} : vector<2x32xf32>, vector<32x8xf32>, vector<2x8xf32> -> vector<2x8xf32>
    %394 = vector.broadcast %270 : vector<1x8xf32> to vector<2x8xf32>
    %395 = arith.addf %393, %394 : vector<2x8xf32>
    %396 = vector.broadcast %370 : f32 to vector<2x8xf32>
    %397 = arith.mulf %396, %395 : vector<2x8xf32>
    %398 = arith.addf %366, %397 : vector<2x8xf32>
    %c8 = arith.constant 8 : index
    %c0_115 = arith.constant 0 : index
    %399 = vector.load %arg23[%c8, %c0_115] : memref<16x8xf32, #tpu.memory_space<vmem>>, vector<2x8xf32>
    tpu.vector_store %arg23[%c8, %c0_115], %398 {strides = array<i32>} : memref<16x8xf32, #tpu.memory_space<vmem>>, vector<2x8xf32>,
    %c5 = arith.constant 5 : index
    %400 = memref.load %arg2[%c5] : memref<8xf32, #tpu.memory_space<smem>>
    %c4_116 = arith.constant 4 : index
    %401 = memref.load %arg2[%c4_116] : memref<8xf32, #tpu.memory_space<smem>>
    %402 = arith.subf %400, %401 : f32
    %cst_117 = arith.constant dense<0.000000e+00> : vector<2x32xf32>
    %403 = tpu.matmul %398, %265, %cst_117 {dimension_numbers = #tpu.dot_dimension_numbers<[1], [0], [0], [1], [0, 0, 1, 1], [], []>} : vector<2x8xf32>, vector<8x32xf32>, vector<2x32xf32> -> vector<2x32xf32>
    %404 = vector.broadcast %266 : vector<1x32xf32> to vector<2x32xf32>
    %405 = arith.addf %403, %404 : vector<2x32xf32>
    %cst_118 = arith.constant 0.000000e+00 : f32
    %406 = vector.broadcast %cst_118 : f32 to vector<2x32xf32>
    %407 = arith.cmpf ogt, %405, %406 : vector<2x32xf32>
    %cst_119 = arith.constant 0.000000e+00 : f32
    %408 = vector.broadcast %cst_119 : f32 to vector<2x32xf32>
    %409 = arith.minimumf %405, %408 : vector<2x32xf32>
    %410 = math.exp %409 : vector<2x32xf32>
    %cst_120 = arith.constant 1.000000e+00 : f32
    %411 = vector.broadcast %cst_120 : f32 to vector<2x32xf32>
    %412 = arith.subf %410, %411 : vector<2x32xf32>
    %413 = arith.select %407, %405, %412 : vector<2x32xi1>, vector<2x32xf32>
    %cst_121 = arith.constant dense<0.000000e+00> : vector<2x32xf32>
    %414 = tpu.matmul %413, %267, %cst_121 {dimension_numbers = #tpu.dot_dimension_numbers<[1], [0], [0], [1], [0, 0, 1, 1], [], []>} : vector<2x32xf32>, vector<32x32xf32>, vector<2x32xf32> -> vector<2x32xf32>
    %415 = vector.broadcast %268 : vector<1x32xf32> to vector<2x32xf32>
    %416 = arith.addf %414, %415 : vector<2x32xf32>
    %cst_122 = arith.constant 0.000000e+00 : f32
    %417 = vector.broadcast %cst_122 : f32 to vector<2x32xf32>
    %418 = arith.cmpf ogt, %416, %417 : vector<2x32xf32>
    %cst_123 = arith.constant 0.000000e+00 : f32
    %419 = vector.broadcast %cst_123 : f32 to vector<2x32xf32>
    %420 = arith.minimumf %416, %419 : vector<2x32xf32>
    %421 = math.exp %420 : vector<2x32xf32>
    %cst_124 = arith.constant 1.000000e+00 : f32
    %422 = vector.broadcast %cst_124 : f32 to vector<2x32xf32>
    %423 = arith.subf %421, %422 : vector<2x32xf32>
    %424 = arith.select %418, %416, %423 : vector<2x32xi1>, vector<2x32xf32>
    %cst_125 = arith.constant dense<0.000000e+00> : vector<2x8xf32>
    %425 = tpu.matmul %424, %269, %cst_125 {dimension_numbers = #tpu.dot_dimension_numbers<[1], [0], [0], [1], [0, 0, 1, 1], [], []>} : vector<2x32xf32>, vector<32x8xf32>, vector<2x8xf32> -> vector<2x8xf32>
    %426 = vector.broadcast %270 : vector<1x8xf32> to vector<2x8xf32>
    %427 = arith.addf %425, %426 : vector<2x8xf32>
    %428 = vector.broadcast %402 : f32 to vector<2x8xf32>
    %429 = arith.mulf %428, %427 : vector<2x8xf32>
    %430 = arith.addf %398, %429 : vector<2x8xf32>
    %c10 = arith.constant 10 : index
    %c0_126 = arith.constant 0 : index
    %431 = vector.load %arg23[%c10, %c0_126] : memref<16x8xf32, #tpu.memory_space<vmem>>, vector<2x8xf32>
    tpu.vector_store %arg23[%c10, %c0_126], %430 {strides = array<i32>} : memref<16x8xf32, #tpu.memory_space<vmem>>, vector<2x8xf32>,
    %c6_127 = arith.constant 6 : index
    %432 = memref.load %arg2[%c6_127] : memref<8xf32, #tpu.memory_space<smem>>
    %c5_128 = arith.constant 5 : index
    %433 = memref.load %arg2[%c5_128] : memref<8xf32, #tpu.memory_space<smem>>
    %434 = arith.subf %432, %433 : f32
    %cst_129 = arith.constant dense<0.000000e+00> : vector<2x32xf32>
    %435 = tpu.matmul %430, %265, %cst_129 {dimension_numbers = #tpu.dot_dimension_numbers<[1], [0], [0], [1], [0, 0, 1, 1], [], []>} : vector<2x8xf32>, vector<8x32xf32>, vector<2x32xf32> -> vector<2x32xf32>
    %436 = vector.broadcast %266 : vector<1x32xf32> to vector<2x32xf32>
    %437 = arith.addf %435, %436 : vector<2x32xf32>
    %cst_130 = arith.constant 0.000000e+00 : f32
    %438 = vector.broadcast %cst_130 : f32 to vector<2x32xf32>
    %439 = arith.cmpf ogt, %437, %438 : vector<2x32xf32>
    %cst_131 = arith.constant 0.000000e+00 : f32
    %440 = vector.broadcast %cst_131 : f32 to vector<2x32xf32>
    %441 = arith.minimumf %437, %440 : vector<2x32xf32>
    %442 = math.exp %441 : vector<2x32xf32>
    %cst_132 = arith.constant 1.000000e+00 : f32
    %443 = vector.broadcast %cst_132 : f32 to vector<2x32xf32>
    %444 = arith.subf %442, %443 : vector<2x32xf32>
    %445 = arith.select %439, %437, %444 : vector<2x32xi1>, vector<2x32xf32>
    %cst_133 = arith.constant dense<0.000000e+00> : vector<2x32xf32>
    %446 = tpu.matmul %445, %267, %cst_133 {dimension_numbers = #tpu.dot_dimension_numbers<[1], [0], [0], [1], [0, 0, 1, 1], [], []>} : vector<2x32xf32>, vector<32x32xf32>, vector<2x32xf32> -> vector<2x32xf32>
    %447 = vector.broadcast %268 : vector<1x32xf32> to vector<2x32xf32>
    %448 = arith.addf %446, %447 : vector<2x32xf32>
    %cst_134 = arith.constant 0.000000e+00 : f32
    %449 = vector.broadcast %cst_134 : f32 to vector<2x32xf32>
    %450 = arith.cmpf ogt, %448, %449 : vector<2x32xf32>
    %cst_135 = arith.constant 0.000000e+00 : f32
    %451 = vector.broadcast %cst_135 : f32 to vector<2x32xf32>
    %452 = arith.minimumf %448, %451 : vector<2x32xf32>
    %453 = math.exp %452 : vector<2x32xf32>
    %cst_136 = arith.constant 1.000000e+00 : f32
    %454 = vector.broadcast %cst_136 : f32 to vector<2x32xf32>
    %455 = arith.subf %453, %454 : vector<2x32xf32>
    %456 = arith.select %450, %448, %455 : vector<2x32xi1>, vector<2x32xf32>
    %cst_137 = arith.constant dense<0.000000e+00> : vector<2x8xf32>
    %457 = tpu.matmul %456, %269, %cst_137 {dimension_numbers = #tpu.dot_dimension_numbers<[1], [0], [0], [1], [0, 0, 1, 1], [], []>} : vector<2x32xf32>, vector<32x8xf32>, vector<2x8xf32> -> vector<2x8xf32>
    %458 = vector.broadcast %270 : vector<1x8xf32> to vector<2x8xf32>
    %459 = arith.addf %457, %458 : vector<2x8xf32>
    %460 = vector.broadcast %434 : f32 to vector<2x8xf32>
    %461 = arith.mulf %460, %459 : vector<2x8xf32>
    %462 = arith.addf %430, %461 : vector<2x8xf32>
    %c12 = arith.constant 12 : index
    %c0_138 = arith.constant 0 : index
    %463 = vector.load %arg23[%c12, %c0_138] : memref<16x8xf32, #tpu.memory_space<vmem>>, vector<2x8xf32>
    tpu.vector_store %arg23[%c12, %c0_138], %462 {strides = array<i32>} : memref<16x8xf32, #tpu.memory_space<vmem>>, vector<2x8xf32>,
    %c7 = arith.constant 7 : index
    %464 = memref.load %arg2[%c7] : memref<8xf32, #tpu.memory_space<smem>>
    %c6_139 = arith.constant 6 : index
    %465 = memref.load %arg2[%c6_139] : memref<8xf32, #tpu.memory_space<smem>>
    %466 = arith.subf %464, %465 : f32
    %cst_140 = arith.constant dense<0.000000e+00> : vector<2x32xf32>
    %467 = tpu.matmul %462, %265, %cst_140 {dimension_numbers = #tpu.dot_dimension_numbers<[1], [0], [0], [1], [0, 0, 1, 1], [], []>} : vector<2x8xf32>, vector<8x32xf32>, vector<2x32xf32> -> vector<2x32xf32>
    %468 = vector.broadcast %266 : vector<1x32xf32> to vector<2x32xf32>
    %469 = arith.addf %467, %468 : vector<2x32xf32>
    %cst_141 = arith.constant 0.000000e+00 : f32
    %470 = vector.broadcast %cst_141 : f32 to vector<2x32xf32>
    %471 = arith.cmpf ogt, %469, %470 : vector<2x32xf32>
    %cst_142 = arith.constant 0.000000e+00 : f32
    %472 = vector.broadcast %cst_142 : f32 to vector<2x32xf32>
    %473 = arith.minimumf %469, %472 : vector<2x32xf32>
    %474 = math.exp %473 : vector<2x32xf32>
    %cst_143 = arith.constant 1.000000e+00 : f32
    %475 = vector.broadcast %cst_143 : f32 to vector<2x32xf32>
    %476 = arith.subf %474, %475 : vector<2x32xf32>
    %477 = arith.select %471, %469, %476 : vector<2x32xi1>, vector<2x32xf32>
    %cst_144 = arith.constant dense<0.000000e+00> : vector<2x32xf32>
    %478 = tpu.matmul %477, %267, %cst_144 {dimension_numbers = #tpu.dot_dimension_numbers<[1], [0], [0], [1], [0, 0, 1, 1], [], []>} : vector<2x32xf32>, vector<32x32xf32>, vector<2x32xf32> -> vector<2x32xf32>
    %479 = vector.broadcast %268 : vector<1x32xf32> to vector<2x32xf32>
    %480 = arith.addf %478, %479 : vector<2x32xf32>
    %cst_145 = arith.constant 0.000000e+00 : f32
    %481 = vector.broadcast %cst_145 : f32 to vector<2x32xf32>
    %482 = arith.cmpf ogt, %480, %481 : vector<2x32xf32>
    %cst_146 = arith.constant 0.000000e+00 : f32
    %483 = vector.broadcast %cst_146 : f32 to vector<2x32xf32>
    %484 = arith.minimumf %480, %483 : vector<2x32xf32>
    %485 = math.exp %484 : vector<2x32xf32>
    %cst_147 = arith.constant 1.000000e+00 : f32
    %486 = vector.broadcast %cst_147 : f32 to vector<2x32xf32>
    %487 = arith.subf %485, %486 : vector<2x32xf32>
    %488 = arith.select %482, %480, %487 : vector<2x32xi1>, vector<2x32xf32>
    %cst_148 = arith.constant dense<0.000000e+00> : vector<2x8xf32>
    %489 = tpu.matmul %488, %269, %cst_148 {dimension_numbers = #tpu.dot_dimension_numbers<[1], [0], [0], [1], [0, 0, 1, 1], [], []>} : vector<2x32xf32>, vector<32x8xf32>, vector<2x8xf32> -> vector<2x8xf32>
    %490 = vector.broadcast %270 : vector<1x8xf32> to vector<2x8xf32>
    %491 = arith.addf %489, %490 : vector<2x8xf32>
    %492 = vector.broadcast %466 : f32 to vector<2x8xf32>
    %493 = arith.mulf %492, %491 : vector<2x8xf32>
    %494 = arith.addf %462, %493 : vector<2x8xf32>
    %c14 = arith.constant 14 : index
    %c0_149 = arith.constant 0 : index
    %495 = vector.load %arg23[%c14, %c0_149] : memref<16x8xf32, #tpu.memory_space<vmem>>, vector<2x8xf32>
    tpu.vector_store %arg23[%c14, %c0_149], %494 {strides = array<i32>} : memref<16x8xf32, #tpu.memory_space<vmem>>, vector<2x8xf32>,
    %c0_150 = arith.constant 0 : index
    %c0_151 = arith.constant 0 : index
    %496 = vector.load %arg23[%c0_150, %c0_151] : memref<16x8xf32, #tpu.memory_space<vmem>>, vector<16x8xf32>
    %c0_152 = arith.constant 0 : index
    %c0_153 = arith.constant 0 : index
    %497 = vector.load %arg15[%c0_152, %c0_153] : memref<8x32xf32, #tpu.memory_space<vmem>>, vector<8x32xf32>
    %cst_154 = arith.constant dense<0.000000e+00> : vector<16x32xf32>
    %498 = tpu.matmul %496, %497, %cst_154 {dimension_numbers = #tpu.dot_dimension_numbers<[1], [0], [0], [1], [0, 0, 1, 1], [], []>} : vector<16x8xf32>, vector<8x32xf32>, vector<16x32xf32> -> vector<16x32xf32>
    %c0_155 = arith.constant 0 : index
    %c0_156 = arith.constant 0 : index
    %499 = vector.load %arg16[%c0_155, %c0_156] : memref<1x32xf32, #tpu.memory_space<vmem>>, vector<1x32xf32>
    %500 = vector.broadcast %499 : vector<1x32xf32> to vector<16x32xf32>
    %501 = arith.addf %498, %500 : vector<16x32xf32>
    %c0_157 = arith.constant 0 : index
    %c0_158 = arith.constant 0 : index
    %502 = vector.load %arg17[%c0_157, %c0_158] : memref<32x4xf32, #tpu.memory_space<vmem>>, vector<32x4xf32>
    %cst_159 = arith.constant dense<0.000000e+00> : vector<16x4xf32>
    %503 = tpu.matmul %501, %502, %cst_159 {dimension_numbers = #tpu.dot_dimension_numbers<[1], [0], [0], [1], [0, 0, 1, 1], [], []>} : vector<16x32xf32>, vector<32x4xf32>, vector<16x4xf32> -> vector<16x4xf32>
    %c0_160 = arith.constant 0 : index
    %c0_161 = arith.constant 0 : index
    %504 = vector.load %arg18[%c0_160, %c0_161] : memref<1x4xf32, #tpu.memory_space<vmem>>, vector<1x4xf32>
    %505 = vector.broadcast %504 : vector<1x4xf32> to vector<16x4xf32>
    %506 = arith.addf %503, %505 : vector<16x4xf32>
    %c0_162 = arith.constant 0 : index
    %c0_163 = arith.constant 0 : index
    %507 = vector.load %arg19[%c0_162, %c0_163] : memref<16x4xf32, #tpu.memory_space<vmem>>, vector<16x4xf32>
    tpu.vector_store %arg19[%c0_162, %c0_163], %506 {strides = array<i32>} : memref<16x4xf32, #tpu.memory_space<vmem>>, vector<16x4xf32>,
    return
  }
}

</mosaic_0001>

<bundles_post_ra>
// kernel: odevae_forward.1
= control target key start
LH: loop header
LB: loop body
LE: loop exit
PB: predicated region body
PF: predicated region fallthrough
CT: control target
= control target key end

     0   :  { %s4545_s0 = inlined_call_operand.vmem [shape: f32[16,5], index: 0, kind: input, shape index: {}]   ;;  %s4546_s1 = inlined_call_operand.vmem [shape: f32[2,8], index: 1, kind: input, shape index: {}]   ;;  %s4547_s2 = inlined_call_operand.vmem [shape: f32[8], index: 2, kind: input, shape index: {}]   ;;  %s4548_s3 = inlined_call_operand.vmem [shape: f32[5,96], index: 3, kind: input, shape index: {}]   ;;  %s4549_s4 = inlined_call_operand.vmem [shape: f32[1,96], index: 4, kind: input, shape index: {}]   ;;  %s4550_s5 = inlined_call_operand.vmem [shape: f32[32,96], index: 5, kind: input, shape index: {}]   ;;  %s4551_s6 = inlined_call_operand.vmem [shape: f32[1,32], index: 6, kind: input, shape index: {}]   ;;  %s4552_s7 = inlined_call_operand.vmem [shape: f32[32,16], index: 7, kind: input, shape index: {}]   ;;  %s4553_s8 = inlined_call_operand.vmem [shape: f32[1,16], index: 8, kind: input, shape index: {}]   ;;  %s4554_s9 = inlined_call_operand.vmem [shape: f32[8,32], index: 9, kind: input, shape index: {}]   ;;  %s4555_s10 = inlined_call_operand.vmem [shape: f32[1,32], index: 10, kind: input, shape index: {}]   ;;  %s4556_s11 = inlined_call_operand.vmem [shape: f32[32,32], index: 11, kind: input, shape index: {}]   ;;  %s4557_s12 = inlined_call_operand.vmem [shape: f32[1,32], index: 12, kind: input, shape index: {}]   ;;  %s4558_s13 = inlined_call_operand.vmem [shape: f32[32,8], index: 13, kind: input, shape index: {}]   ;;  %s4559_s14 = inlined_call_operand.vmem [shape: f32[1,8], index: 14, kind: input, shape index: {}]   ;;  %s4560_s15 = inlined_call_operand.vmem [shape: f32[8,32], index: 15, kind: input, shape index: {}]   ;;  %s4561_s16 = inlined_call_operand.vmem [shape: f32[1,32], index: 16, kind: input, shape index: {}]   ;;  %s4562_s17 = inlined_call_operand.vmem [shape: f32[32,4], index: 17, kind: input, shape index: {}]   ;;  %s4563_s18 = inlined_call_operand.vmem [shape: f32[1,4], index: 18, kind: input, shape index: {}]   ;;  %s4564_s19 = inlined_call_operand.vmem [shape: f32[16,4], index: 19, kind: output, shape index: {0}]   ;;  %s4565_s20 = inlined_call_operand.hbm [shape: f32[2,8], index: 20, kind: output, shape index: {1}]   ;;  %s4566_s21 = inlined_call_operand.hbm [shape: f32[2,8], index: 21, kind: output, shape index: {2}]   ;;  %s4567_s22 = inlined_call_operand.hbm [shape: f32[2,8], index: 22, kind: output, shape index: {3}]  }
   0x1   :  { %4570 = sst [smem:[#allocation13_spill]] %s4545_s0 }
   0x2   :  { %4571 = sst [smem:[#allocation14_spill]] %s4546_s1 }
   0x3   :  { %4572 = sst [smem:[#allocation15_spill]] %s4547_s2 }
   0x4   :  { %4573 = sst [smem:[#allocation16_spill]] %s4548_s3 }
   0x5   :  { %4574 = sst [smem:[#allocation17_spill]] %s4549_s4 }
   0x6   :  { %4575 = sst [smem:[#allocation18_spill]] %s4550_s5 }
   0x7   :  { %4576 = sst [smem:[#allocation19_spill]] %s4551_s6 }
   0x8   :  { %28 = vsyncpa [#allocation5], 0 }
   0x9   :  { %29 = vsyncpa [#allocation4], 0 }
   0xa   :  { %30 = vsyncpa [#allocation8], 0  ;;  %s4577_s29 = sld [smem:[#allocation15_spill]] }
  0x10   :  { %s41_s30 = sshll.u32 %s4577_s29, 4  ;;  %s42_s30 = int_to_ptr.vmem [resolvable:$true] %s41_s30 }
  0x11   :  { %s3844_s4 = scalar_lea.vmem %s42_s30, 16  ;;  %p3849_p1 = scmp.lt.s32.totalorder %s42_s30, %s42_s30 }
  0x12   :  { %p3845_p0 = scmp.ne.s32.totalorder %s42_s30, %s3844_s4  ;;  %p3850_p2 = scmp.lt.s32.totalorder %s3844_s4, %s3844_s4 }
  0x14   :  { %p3851_p3 = por %p3850_p2, %p3849_p1 }
  0x16   :  { %p3852_p4 = pnand %p3851_p3, %p3845_p0 }
  0x18   :  { %3855 = shalt.err (!%p3852_p4)
}
  0x19   :  { %s3928_s0 = smov [#allocation3]  }
  0x1a   :  { %44 = dma.vmem_to_smem %s42_s30, 16, %s3928_s0, [#allocation5]  }
  0x1b   :  { %3922 = dma.done.wait [#allocation5], 16  }
  0x1c   :  { %3923 = vsyncadd [#allocation5], 4294967280 }
  0x1d   :  { %80 = sfence }
  0x1e   :  { %s4578_s5 = sld [smem:[#allocation18_spill]]  ;;  %vm98_vm0 = vcmask 1044480   ;;  %vm91_vm1 = vcmask 39936   ;;  %v3929_v3 = vmov 0.0|0.0   ;;  %s4579_s29 = sld [smem:[#allocation16_spill]]  ;;  %vm3930_vm2 = vmmov 0  }
  0x1f   :  { %3610 = vmatprep.subr.bf16.mxu1 %v3929_v3  ;;  %s4580_s0 = sld [smem:[#allocation13_spill]]  ;;  %s4581_s25 = sld [smem:[#allocation19_spill]]  ;;  %v3931_v11 = vmov 0.0   ;;  %vm182_vm3 = vcmask 261120   ;;  %vm1133_vm4 = vcmask 58368   ;;  %vm1173_vm5 = vcmask 64512  }
  0x20   :  { %3314 = vmatprep.mubr.msk.f32.mxu1 %vm3930_vm2, %v3931_v11  ;;  %s4582_s27 = sld [smem:[#allocation17_spill]]  ;;  %s3933_s3 = smov 96  }
  0x21   :  { %s4379_s30 = sld [smem:[#allocation3 + $0x3]]  ;;  %s4433_s1 = sld [smem:[#allocation3 + $0x5]] }
  0x22   :  { %s3147_s2 = sld [smem:[#allocation3 + $0x7]] }
  0x24   :  { %v177_v0 = vld [vmem:[%s4578_s5] sm:$0xff]  ;;  %v178_v1 = vld [vmem:[%s4578_s5 + $0x8] sm:$0xff]  ;;  %v179_v2 = vld [vmem:[%s4578_s5 + $0x10] sm:$0xff] }
  0x25   :  { %v4066_v4 = vpack.c.bf16 %v178_v1, %v177_v0  ;;  %v180_v5 = vld [vmem:[%s4578_s5 + $0x18] sm:$0xff]  ;;  %v83_v6 = vld [vmem:[%s4579_s29] sm:$0x1f]  ;;  %v82_v8 = vld [vmem:[%s4580_s0 + $0x8] sm:$0xff]  ;;  %s3932_s5 = smov 64  }
  0x26   :  { %v81_v7 = vld [vmem:[%s4580_s0] sm:$0xff]  ;;  %3301 = vmatprep.subr.msk.mxu0 %vm98_vm0, %v83_v6  ;;  %v4085_v10 = vpack.c.bf16 %v180_v5, %v179_v2  ;;  %s4406_s0 = sld [smem:[#allocation3 + $0x4]] }
  0x27   :  { %3303 = vmatprep.mubr.msk.f32.mxu0 %vm91_vm1, %v81_v7  ;;  %v3086_v9 = vld [vmem:[%s4581_s25] ss:$0 sm:$0xff]  ;;  %3612 = vmatpush3.bf16.msra.mxu1 %v4066_v4  ;;  %s3934_s25 = smov 120  }
  0x28   :  { %3302 = vmatpush3.msk.msra.mxu0 %vm98_vm0, %v83_v6  ;;  %3613 = vmatprep.subr.bf16.mxu1 %v3929_v3  ;;  %v3081_v13 = vld [vmem:[%s4582_s27] ss:$0 sm:$0xff]  ;;  %s4583_s27 = sld [smem:[#allocation14_spill]] }
  0x29   :  { %3304 = vmatmul.mubr.msk.f32.vlgmr.msra.gmra.mrb[0].mxu0 %vm91_vm1, %v82_v8  ;;  %271 = vrot.lane.b32.xlu0 %v3086_v9, %s3932_s5 }
  0x2a   :  { %3616 = vmatprep.subr.bf16.mxu0 %v3929_v3  ;;  %3325 = vmatprep.mubr.msk.f32.mxu0 %vm3930_vm2, %v3931_v11 }
  0x2b   :  { %3615 = vmatpush3.bf16.msra.mxu1 %v4085_v10  ;;  %3618 = vmatpush3.bf16.msra.mxu0 %v4066_v4 }
  0x2c   :  { %3619 = vmatprep.subr.bf16.mxu0 %v3929_v3  ;;  %3622 = vmatprep.subr.bf16.mxu1 %v3929_v3  ;;  %s1899_s23 = ssub.f32 %s4406_s0, %s4379_s30 }
  0x2d   :  { %s2137_s24 = ssub.f32 %s4433_s1, %s4406_s0 }
  0x2e   :  { %3315 = vmatmul.mubr.f32.vlgmr.msra.gmra.mrb[0].mxu1 %v3931_v11 }
  0x2f   :  { %3621 = vmatpush3.bf16.msra.mxu0 %v4085_v10  ;;  %3624 = vmatpush3.bf16.msra.mxu1 %v4066_v4 }
  0x30   :  { %3625 = vmatprep.subr.bf16.mxu1 %v3929_v3  ;;  %3336 = vmatprep.mubr.msk.f32.mxu1 %vm3930_vm2, %v3931_v11 }
  0x31   :  { %3628 = vmatprep.subr.bf16.mxu0 %v3929_v3 }
  0x33   :  { %3627 = vmatpush3.bf16.msra.mxu1 %v4085_v10 }
  0x34   :  { %3634 = vmatprep.subr.bf16.mxu1 %v3929_v3 }
  0x9b   :  { %v4113_v16 = vpop.permute.xlu0 %271 }
  0xfc   :  { %v3305_v12 = vpop.f32.mrb[0].mxu0 }
  0xfd   :  { %v168_v14 = vpop.f32.mrb[1].mxu0  ;;  %v4117_v21 = vadd.f32 %v3305_v12, %v3081_v13 }
  0xfe   :  { %v4111_v15 = vadd.f32 %v3081_v13, %v168_v14 }
 0x101   :  { %v252_v17 = vpop.f32.mrb[0].mxu1 }
 0x102   :  { %v274_v18 = vadd.f32 %v4113_v16, %v252_v17  ;;  %v3316_v19 = vpop.f32.mrb[1].mxu1  ;;  %v257_v22 = vrot.slane %v252_v17, 2 }
 0x104   :  { %v276_v20 = vrot.slane %v274_v18, 2  ;;  %v259_v23 = vadd.f32 %v257_v22, %v4117_v21 }
 0x106   :  { %277 = vrot.lane.b32.xlu0 %v276_v20, %s3932_s5  ;;  %v3085_v24 = vmul.f32 -1.442695, %v259_v23 }
 0x108   :  { %3766 = vpow2.f32 %v3085_v24 }
 0x112   :  { %v3767_v25 = vpop.eup %3766 }
 0x113   :  { %v263_v26 = vadd.f32 1.0, %v3767_v25 }
 0x115   :  { %3768 = vrcp.f32 %v263_v26 }
 0x11f   :  { %v3769_v27 = vpop.eup %3768 }
 0x120   :  { %v287_v33 = vsub.f32 1.0, %v3769_v27  ;;  %v293_v35 = vmul.f32 0.0, %v3769_v27 }
 0x178   :  { %v278_v28 = vpop.permute.xlu0 %277 }
 0x179   :  { %v280_v29 = vmul.f32 %v3769_v27, %v278_v28 }
 0x17b   :  { %282 = vrot.lane.b32.xlu1 %v280_v29, %s3932_s5 }
 0x1ed   :  { %v283_v30 = vpop.permute.xlu1 %282 }
 0x1ee   :  { %v285_v31 = vadd.f32 %v283_v30, %v4117_v21 }
 0x1f0   :  { %3770 = vtanh.f32 %v285_v31 }
 0x1fa   :  { %v3771_v32 = vpop.eup %3770 }
 0x1fb   :  { %289 = vrot.lane.b32.xlu1 %v3771_v32, %s3933_s3 }
 0x26d   :  { %v290_v34 = vpop.permute.xlu1 %289 }
 0x26e   :  { %v292_v36 = vmul.f32 %v290_v34, %v287_v33 }
 0x270   :  { %v294_v37 = vadd.f32 %v293_v35, %v292_v36 }
 0x272   :  { %v296_v38 = vrot.slane %v294_v37, 6  ;;  %v400_v55 = vrot.slane %v294_v37, 2 }
 0x274   :  { %297 = vrot.lane.b32.xlu0 %v296_v38, %s3933_s3 }
 0x2e6   :  { %v298_v39 = vpop.permute.xlu0 %297 }
 0x2e7   :  { %3326 = vmatmul.mubr.msk.f32.vlgmr.msra.gmra.mrb[2].mxu0 %vm182_vm3, %v298_v39 }
 0x2e8   :  { %3630 = vmatpush3.bf16.msra.mxu0 %v4066_v4  ;;  %3347 = vmatprep.mubr.msk.f32.mxu0 %vm3930_vm2, %v3931_v11 }
 0x2e9   :  { %3631 = vmatprep.subr.bf16.mxu0 %v3929_v3 }
 0x2ec   :  { %3633 = vmatpush3.bf16.msra.mxu0 %v4085_v10 }
 0x2ed   :  { %3640 = vmatprep.subr.bf16.mxu0 %v3929_v3 }
 0x3ba   :  { %v367_v40 = vpop.f32.mrb[2].mxu0 }
 0x3bb   :  { %v381_v41 = vadd.f32 %v367_v40, %v4113_v16  ;;  %v3327_v42 = vpop.f32.mrb[3].mxu0  ;;  %v372_v44 = vrot.slane %v367_v40, 4 }
 0x3bd   :  { %v383_v43 = vrot.slane %v381_v41, 4  ;;  %v374_v45 = vadd.f32 %v372_v44, %v4117_v21 }
 0x3bf   :  { %384 = vrot.lane.b32.xlu1 %v383_v43, %s3932_s5  ;;  %v3088_v46 = vmul.f32 -1.442695, %v374_v45 }
 0x3c1   :  { %3772 = vpow2.f32 %v3088_v46 }
 0x3cb   :  { %v3773_v47 = vpop.eup %3772 }
 0x3cc   :  { %v378_v48 = vadd.f32 1.0, %v3773_v47 }
 0x3ce   :  { %3774 = vrcp.f32 %v378_v48 }
 0x3d8   :  { %v3775_v49 = vpop.eup %3774 }
 0x3d9   :  { %v394_v56 = vsub.f32 1.0, %v3775_v49  ;;  %v402_v58 = vmul.f32 %v3775_v49, %v400_v55 }
 0x431   :  { %v385_v50 = vpop.permute.xlu1 %384 }
 0x432   :  { %v387_v51 = vmul.f32 %v3775_v49, %v385_v50 }
 0x434   :  { %389 = vrot.lane.b32.xlu0 %v387_v51, %s3932_s5 }
 0x4a6   :  { %v390_v52 = vpop.permute.xlu0 %389 }
 0x4a7   :  { %v392_v53 = vadd.f32 %v390_v52, %v4117_v21 }
 0x4a9   :  { %3776 = vtanh.f32 %v392_v53 }
 0x4b3   :  { %v3777_v54 = vpop.eup %3776 }
 0x4b4   :  { %396 = vrot.lane.b32.xlu1 %v3777_v54, %s3933_s3 }
 0x526   :  { %v397_v57 = vpop.permute.xlu1 %396 }
 0x527   :  { %v399_v59 = vmul.f32 %v397_v57, %v394_v56 }
 0x529   :  { %v403_v60 = vadd.f32 %v402_v58, %v399_v59 }
 0x52b   :  { %v405_v61 = vrot.slane %v403_v60, 4  ;;  %v509_v20 = vrot.slane %v403_v60, 2 }
 0x52d   :  { %406 = vrot.lane.b32.xlu0 %v405_v61, %s3933_s3 }
 0x59f   :  { %v407_v62 = vpop.permute.xlu0 %406 }
 0x5a0   :  { %3337 = vmatmul.mubr.msk.f32.vlgmr.msra.gmra.mrb[2].mxu1 %vm182_vm3, %v407_v62 }
 0x5a1   :  { %3636 = vmatpush3.bf16.msra.mxu1 %v4066_v4  ;;  %3358 = vmatprep.mubr.msk.f32.mxu1 %vm3930_vm2, %v3931_v11 }
 0x5a2   :  { %3637 = vmatprep.subr.bf16.mxu1 %v3929_v3 }
 0x5a5   :  { %3639 = vmatpush3.bf16.msra.mxu1 %v4085_v10 }
 0x5a6   :  { %3646 = vmatprep.subr.bf16.mxu1 %v3929_v3 }
 0x673   :  { %v476_v63 = vpop.f32.mrb[2].mxu1 }
 0x674   :  { %v490_v0 = vadd.f32 %v476_v63, %v4113_v16  ;;  %v3338_v1 = vpop.f32.mrb[3].mxu1  ;;  %v481_v5 = vrot.slane %v476_v63, 6 }
 0x676   :  { %v492_v2 = vrot.slane %v490_v0, 6  ;;  %v483_v6 = vadd.f32 %v481_v5, %v4117_v21 }
 0x678   :  { %493 = vrot.lane.b32.xlu1 %v492_v2, %s3932_s5  ;;  %v3090_v7 = vmul.f32 -1.442695, %v483_v6 }
 0x67a   :  { %3778 = vpow2.f32 %v3090_v7 }
 0x684   :  { %v3779_v8 = vpop.eup %3778 }
 0x685   :  { %v487_v9 = vadd.f32 1.0, %v3779_v8 }
 0x687   :  { %3780 = vrcp.f32 %v487_v9 }
 0x691   :  { %v3781_v12 = vpop.eup %3780 }
 0x692   :  { %v503_v22 = vsub.f32 1.0, %v3781_v12  ;;  %v511_v24 = vmul.f32 %v3781_v12, %v509_v20 }
 0x6ea   :  { %v494_v13 = vpop.permute.xlu1 %493 }
 0x6eb   :  { %v496_v14 = vmul.f32 %v3781_v12, %v494_v13 }
 0x6ed   :  { %498 = vrot.lane.b32.xlu0 %v496_v14, %s3932_s5 }
 0x75f   :  { %v499_v17 = vpop.permute.xlu0 %498 }
 0x760   :  { %v501_v18 = vadd.f32 %v499_v17, %v4117_v21 }
 0x762   :  { %3782 = vtanh.f32 %v501_v18 }
 0x76c   :  { %v3783_v19 = vpop.eup %3782 }
 0x76d   :  { %505 = vrot.lane.b32.xlu1 %v3783_v19, %s3933_s3 }
 0x7df   :  { %v506_v23 = vpop.permute.xlu1 %505 }
 0x7e0   :  { %v508_v25 = vmul.f32 %v506_v23, %v503_v22 }
 0x7e2   :  { %v512_v26 = vadd.f32 %v511_v24, %v508_v25 }
 0x7e4   :  { %v514_v27 = vrot.slane %v512_v26, 2 }
 0x7e6   :  { %515 = vrot.lane.b32.xlu0 %v514_v27, %s3933_s3 }
 0x858   :  { %v516_v28 = vpop.permute.xlu0 %515 }
 0x859   :  { %3348 = vmatmul.mubr.msk.f32.vlgmr.msra.gmra.mrb[4].mxu0 %vm182_vm3, %v516_v28 }
 0x85a   :  { %3642 = vmatpush3.bf16.msra.mxu0 %v4066_v4  ;;  %3369 = vmatprep.mubr.msk.f32.mxu0 %vm3930_vm2, %v3931_v11 }
 0x85b   :  { %3643 = vmatprep.subr.bf16.mxu0 %v3929_v3 }
 0x85e   :  { %3645 = vmatpush3.bf16.msra.mxu0 %v4085_v10 }
 0x85f   :  { %3652 = vmatprep.subr.bf16.mxu0 %v3929_v3 }
 0x92c   :  { %v585_v29 = vpop.f32.mrb[4].mxu0 }
 0x92d   :  { %v596_v30 = vadd.f32 %v585_v29, %v4113_v16  ;;  %v3349_v31 = vpop.f32.mrb[5].mxu0  ;;  %v589_v32 = vadd.f32 %v585_v29, %v4117_v21 }
 0x92f   :  { %598 = vrot.lane.b32.xlu1 %v596_v30, %s3932_s5  ;;  %v3092_v33 = vmul.f32 -1.442695, %v589_v32 }
 0x931   :  { %3784 = vpow2.f32 %v3092_v33 }
 0x93b   :  { %v3785_v34 = vpop.eup %3784 }
 0x93c   :  { %v593_v35 = vadd.f32 1.0, %v3785_v34 }
 0x93e   :  { %3786 = vrcp.f32 %v593_v35 }
 0x948   :  { %v3787_v36 = vpop.eup %3786 }
 0x949   :  { %v608_v42 = vsub.f32 1.0, %v3787_v36  ;;  %v615_v44 = vmul.f32 %v3787_v36, %v514_v27 }
 0x9a1   :  { %v599_v37 = vpop.permute.xlu1 %598 }
 0x9a2   :  { %v601_v38 = vmul.f32 %v3787_v36, %v599_v37 }
 0x9a4   :  { %603 = vrot.lane.b32.xlu0 %v601_v38, %s3932_s5 }
 0xa16   :  { %v604_v39 = vpop.permute.xlu0 %603 }
 0xa17   :  { %v606_v40 = vadd.f32 %v604_v39, %v4117_v21 }
 0xa19   :  { %3788 = vtanh.f32 %v606_v40 }
 0xa23   :  { %v3789_v41 = vpop.eup %3788 }
 0xa24   :  { %610 = vrot.lane.b32.xlu1 %v3789_v41, %s3933_s3 }
 0xa96   :  { %v611_v43 = vpop.permute.xlu1 %610 }
 0xa97   :  { %v613_v45 = vmul.f32 %v611_v43, %v608_v42 }
 0xa99   :  { %v616_v46 = vadd.f32 %v615_v44, %v613_v45 }
 0xa9b   :  { %618 = vrot.lane.b32.xlu0 %v616_v46, %s3933_s3  ;;  %v721_v62 = vrot.slane %v616_v46, 2 }
 0xb0d   :  { %v619_v47 = vpop.permute.xlu0 %618 }
 0xb0e   :  { %3359 = vmatmul.mubr.msk.f32.vlgmr.msra.gmra.mrb[4].mxu1 %vm182_vm3, %v619_v47 }
 0xb0f   :  { %3648 = vmatpush3.bf16.msra.mxu1 %v4066_v4  ;;  %3380 = vmatprep.mubr.msk.f32.mxu1 %vm3930_vm2, %v3931_v11 }
 0xb10   :  { %3649 = vmatprep.subr.bf16.mxu1 %v3929_v3 }
 0xb13   :  { %3651 = vmatpush3.bf16.msra.mxu1 %v4085_v10 }
 0xb14   :  { %3658 = vmatprep.subr.bf16.mxu1 %v3929_v3 }
 0xbe1   :  { %v688_v21 = vpop.f32.mrb[4].mxu1 }
 0xbe2   :  { %v702_v48 = vadd.f32 %v688_v21, %v4113_v16  ;;  %v3360_v49 = vpop.f32.mrb[5].mxu1  ;;  %v693_v51 = vrot.slane %v688_v21, 2 }
 0xbe4   :  { %v704_v50 = vrot.slane %v702_v48, 2  ;;  %v695_v52 = vadd.f32 %v693_v51, %v4111_v15 }
 0xbe6   :  { %705 = vrot.lane.b32.xlu1 %v704_v50, %s3932_s5  ;;  %v3094_v53 = vmul.f32 -1.442695, %v695_v52 }
 0xbe8   :  { %3790 = vpow2.f32 %v3094_v53 }
 0xbf2   :  { %v3791_v54 = vpop.eup %3790 }
 0xbf3   :  { %v699_v55 = vadd.f32 1.0, %v3791_v54 }
 0xbf5   :  { %3792 = vrcp.f32 %v699_v55 }
 0xbff   :  { %v3793_v56 = vpop.eup %3792 }
 0xc00   :  { %v715_v63 = vsub.f32 1.0, %v3793_v56  ;;  %v723_v1 = vmul.f32 %v3793_v56, %v721_v62 }
 0xc58   :  { %v706_v57 = vpop.permute.xlu1 %705 }
 0xc59   :  { %v708_v58 = vmul.f32 %v3793_v56, %v706_v57 }
 0xc5b   :  { %710 = vrot.lane.b32.xlu0 %v708_v58, %s3932_s5 }
 0xccd   :  { %v711_v59 = vpop.permute.xlu0 %710 }
 0xcce   :  { %v713_v60 = vadd.f32 %v711_v59, %v4111_v15 }
 0xcd0   :  { %3794 = vtanh.f32 %v713_v60 }
 0xcda   :  { %v3795_v61 = vpop.eup %3794 }
 0xcdb   :  { %717 = vrot.lane.b32.xlu1 %v3795_v61, %s3933_s3 }
 0xd4d   :  { %v718_v0 = vpop.permute.xlu1 %717 }
 0xd4e   :  { %v720_v2 = vmul.f32 %v718_v0, %v715_v63 }
 0xd50   :  { %v724_v5 = vadd.f32 %v723_v1, %v720_v2 }
 0xd52   :  { %v726_v6 = vrot.slane %v724_v5, 6  ;;  %v830_v26 = vrot.slane %v724_v5, 2 }
 0xd54   :  { %727 = vrot.lane.b32.xlu0 %v726_v6, %s3933_s3  ;;  %v1048_v6 = vld [vmem:[%s4552_s7 + $0x8] sm:$0xff] }
 0xdc6   :  { %v728_v7 = vpop.permute.xlu0 %727 }
 0xdc7   :  { %3370 = vmatmul.mubr.msk.f32.vlgmr.msra.gmra.mrb[6].mxu0 %vm182_vm3, %v728_v7  ;;  %v1049_v7 = vld [vmem:[%s4552_s7 + $0x10] sm:$0xff] }
 0xdc8   :  { %3654 = vmatpush3.bf16.msra.mxu0 %v4066_v4  ;;  %3391 = vmatprep.mubr.msk.f32.mxu0 %vm3930_vm2, %v3931_v11 }
 0xdc9   :  { %3655 = vmatprep.subr.bf16.mxu0 %v3929_v3 }
 0xdcc   :  { %3657 = vmatpush3.bf16.msra.mxu0 %v4085_v10 }
 0xdcd   :  { %3405 = vmatprep.subr.mxu0 %v3931_v11 }
 0xe9a   :  { %v797_v8 = vpop.f32.mrb[6].mxu0 }
 0xe9b   :  { %v811_v9 = vadd.f32 %v797_v8, %v4113_v16  ;;  %v3371_v12 = vpop.f32.mrb[7].mxu0  ;;  %v802_v14 = vrot.slane %v797_v8, 4 }
 0xe9d   :  { %v813_v13 = vrot.slane %v811_v9, 4  ;;  %v804_v17 = vadd.f32 %v802_v14, %v4111_v15  ;;  %v1050_v9 = vld [vmem:[%s4552_s7 + $0x18] sm:$0xff] }
 0xe9f   :  { %814 = vrot.lane.b32.xlu1 %v813_v13, %s3932_s5  ;;  %v3096_v4 = vmul.f32 -1.442695, %v804_v17 }
 0xea1   :  { %3796 = vpow2.f32 %v3096_v4 }
 0xeab   :  { %v3797_v18 = vpop.eup %3796 }
 0xeac   :  { %v808_v19 = vadd.f32 1.0, %v3797_v18 }
 0xeae   :  { %3798 = vrcp.f32 %v808_v19 }
 0xeb8   :  { %v3799_v20 = vpop.eup %3798 }
 0xeb9   :  { %v824_v27 = vsub.f32 1.0, %v3799_v20  ;;  %v832_v29 = vmul.f32 %v3799_v20, %v830_v26  ;;  %v4238_v26 = vld [vmem:[%s4554_s9] sm:$0xff] }
 0xf11   :  { %v815_v22 = vpop.permute.xlu1 %814 }
 0xf12   :  { %v817_v10 = vmul.f32 %v3799_v20, %v815_v22  ;;  %v3101_v20 = vld [vmem:[%s4553_s8] ss:$0 sm:$0xff] }
 0xf14   :  { %819 = vrot.lane.b32.xlu0 %v817_v10, %s3932_s5 }
 0xf86   :  { %v820_v23 = vpop.permute.xlu0 %819 }
 0xf87   :  { %v822_v24 = vadd.f32 %v820_v23, %v4111_v15 }
 0xf89   :  { %3800 = vtanh.f32 %v822_v24 }
 0xf93   :  { %v3801_v25 = vpop.eup %3800 }
 0xf94   :  { %826 = vrot.lane.b32.xlu1 %v3801_v25, %s3933_s3 }
0x1006   :  { %v827_v28 = vpop.permute.xlu1 %826 }
0x1007   :  { %v829_v30 = vmul.f32 %v827_v28, %v824_v27 }
0x1009   :  { %v833_v31 = vadd.f32 %v832_v29, %v829_v30  ;;  %v1140_v29 = vld [vmem:[%s4583_s27] sm:$0x3] }
0x100b   :  { %v835_v32 = vrot.slane %v833_v31, 4  ;;  %v939_v48 = vrot.slane %v833_v31, 2 }
0x100d   :  { %836 = vrot.lane.b32.xlu0 %v835_v32, %s3933_s3 }
0x107f   :  { %v837_v33 = vpop.permute.xlu0 %836 }
0x1080   :  { %3381 = vmatmul.mubr.msk.f32.vlgmr.msra.gmra.mrb[6].mxu1 %vm182_vm3, %v837_v33  ;;  %v1153_v33 = vld [vmem:[%s4556_s11] sm:$0xff] }
0x1081   :  { %3402 = vmatprep.mubr.msk.f32.mxu1 %vm3930_vm2, %v3931_v11 }
0x1153   :  { %v906_v34 = vpop.f32.mrb[6].mxu1 }
0x1154   :  { %v920_v35 = vadd.f32 %v906_v34, %v4113_v16  ;;  %v3382_v36 = vpop.f32.mrb[7].mxu1  ;;  %v911_v38 = vrot.slane %v906_v34, 6  ;;  %v1154_v34 = vld [vmem:[%s4556_s11 + $0x8] sm:$0xff] }
0x1155   :  { %v1155_v36 = vld [vmem:[%s4556_s11 + $0x10] sm:$0xff] }
0x1156   :  { %v922_v37 = vrot.slane %v920_v35, 6  ;;  %v913_v39 = vadd.f32 %v911_v38, %v4111_v15  ;;  %v4262_v35 = vpack.c.bf16 %v1154_v34, %v1153_v33 }
0x1158   :  { %923 = vrot.lane.b32.xlu1 %v922_v37, %s3932_s5  ;;  %v3098_v40 = vmul.f32 -1.442695, %v913_v39  ;;  %v1156_v37 = vld [vmem:[%s4556_s11 + $0x18] sm:$0xff]  ;;  %v4279_v39 = vld [vmem:[%s4555_s10] ss:$0 sm:$0xff]  ;;  %s4459_s10 = sld [smem:[#allocation3 + $0x6]] }
0x1159   :  { %v4272_v38 = vpack.c.bf16 %v1156_v37, %v1155_v36 }
0x115a   :  { %3802 = vpow2.f32 %v3098_v40 }
0x115e   :  { %s2375_s11 = ssub.f32 %s4459_s10, %s4433_s1 }
0x115f   :  { %s2613_s27 = ssub.f32 %s3147_s2, %s4459_s10 }
0x1164   :  { %v3803_v41 = vpop.eup %3802 }
0x1165   :  { %v917_v42 = vadd.f32 1.0, %v3803_v41 }
0x1167   :  { %3804 = vrcp.f32 %v917_v42 }
0x1171   :  { %v3805_v43 = vpop.eup %3804 }
0x1172   :  { %v933_v49 = vsub.f32 1.0, %v3805_v43  ;;  %v941_v51 = vmul.f32 %v3805_v43, %v939_v48  ;;  %v1159_v48 = vld [vmem:[%s4558_s13 + $0x8] sm:$0xff] }
0x11ca   :  { %v924_v44 = vpop.permute.xlu1 %923 }
0x11cb   :  { %v926_v45 = vmul.f32 %v3805_v43, %v924_v44 }
0x11cd   :  { %928 = vrot.lane.b32.xlu0 %v926_v45, %s3932_s5 }
0x123f   :  { %v929_v46 = vpop.permute.xlu0 %928 }
0x1240   :  { %v931_v47 = vadd.f32 %v929_v46, %v4111_v15 }
0x1242   :  { %3806 = vtanh.f32 %v931_v47 }
0x124c   :  { %v3807_v21 = vpop.eup %3806 }
0x124d   :  { %935 = vrot.lane.b32.xlu1 %v3807_v21, %s3933_s3  ;;  %v1158_v21 = vld [vmem:[%s4558_s13] sm:$0xff] }
0x12bf   :  { %v936_v50 = vpop.permute.xlu1 %935 }
0x12c0   :  { %v938_v52 = vmul.f32 %v936_v50, %v933_v49  ;;  %v4293_v49 = vpack.c.bf16 %v1159_v48, %v1158_v21  ;;  %v1160_v50 = vld [vmem:[%s4558_s13 + $0x10] sm:$0xff] }
0x12c2   :  { %v942_v53 = vadd.f32 %v941_v51, %v938_v52  ;;  %v1161_v51 = vld [vmem:[%s4558_s13 + $0x18] sm:$0xff]  ;;  %s1165_s13 = sld [smem:[#allocation3]] }
0x12c3   :  { %v4303_v52 = vpack.c.bf16 %v1161_v51, %v1160_v50 }
0x12c4   :  { %v944_v54 = vrot.slane %v942_v53, 2  ;;  %v4310_v53 = vld [vmem:[%s4557_s12] ss:$0 sm:$0xff]  ;;  %s4320_s12 = sld [smem:[#allocation3 + $0x1]] }
0x12c6   :  { %945 = vrot.lane.b32.xlu0 %v944_v54, %s3933_s3 }
0x12ca   :  { %s1166_s9 = ssub.f32 %s4320_s12, %s1165_s13 }
0x1338   :  { %v946_v55 = vpop.permute.xlu0 %945 }
0x1339   :  { %3392 = vmatmul.mubr.msk.f32.vlgmr.msra.gmra.mrb[8].mxu0 %vm182_vm3, %v946_v55 }
0x133a   :  { %3407 = vmatprep.mubr.msk.f32.mxu0 %vm3930_vm2, %v3931_v11  ;;  %3406 = vmatpush3.msra.mxu0 %v4238_v26 }
0x133b   :  { %3664 = vmatprep.subr.bf16.mxu0 %v3929_v3 }
0x140c   :  { %v1015_v56 = vpop.f32.mrb[8].mxu0 }
0x140d   :  { %v1026_v57 = vadd.f32 %v1015_v56, %v4113_v16  ;;  %v3393_v58 = vpop.f32.mrb[9].mxu0  ;;  %v1019_v59 = vadd.f32 %v1015_v56, %v4111_v15  ;;  %v1047_v16 = vld [vmem:[%s4552_s7] sm:$0xff] }
0x140e   :  { %v3659_v8 = vpack.c.bf16 %v1048_v6, %v1047_v16 }
0x140f   :  { %1028 = vrot.lane.b32.xlu1 %v1026_v57, %s3932_s5  ;;  %v3100_v60 = vmul.f32 -1.442695, %v1019_v59 }
0x1410   :  { %3660 = vmatpush3.bf16.msra.mxu1 %v3659_v8 }
0x1411   :  { %3808 = vpow2.f32 %v3100_v60  ;;  %3661 = vmatprep.subr.bf16.mxu1 %v3929_v3 }
0x141b   :  { %v3809_v61 = vpop.eup %3808 }
0x141c   :  { %v1023_v62 = vadd.f32 1.0, %v3809_v61 }
0x141e   :  { %3810 = vrcp.f32 %v1023_v62  ;;  %v4326_v62 = vld [vmem:[%s4559_s14] ss:$0 sm:$0xff]  ;;  %s4352_s14 = sld [smem:[#allocation3 + $0x2]] }
0x1424   :  { %s1423_s29 = ssub.f32 %s4352_s14, %s4320_s12 }
0x1425   :  { %s1661_s4 = ssub.f32 %s4379_s30, %s4352_s14  ;;  %s3935_s14 = smov [#allocation7]  }
0x1426   :  { %s3936_s30 = smov [#allocation6]  }
0x1427   :  { %v1893_v51 = vstv %s1661_s4 }
0x1428   :  { %v3811_v63 = vpop.eup %3810 }
0x1429   :  { %v1038_v13 = vsub.f32 1.0, %v3811_v63  ;;  %v1045_v17 = vmul.f32 %v3811_v63, %v944_v54 }
0x1481   :  { %v1029_v0 = vpop.permute.xlu1 %1028 }
0x1482   :  { %v1031_v1 = vmul.f32 %v3811_v63, %v1029_v0  ;;  %v1417_v0 = vstv %s1166_s9 }
0x1484   :  { %1033 = vrot.lane.b32.xlu0 %v1031_v1, %s3932_s5 }
0x14f6   :  { %v1034_v2 = vpop.permute.xlu0 %1033 }
0x14f7   :  { %v1036_v5 = vadd.f32 %v1034_v2, %v4111_v15  ;;  %v3662_v15 = vpack.c.bf16 %v1050_v9, %v1049_v7 }
0x14f9   :  { %3812 = vtanh.f32 %v1036_v5  ;;  %3663 = vmatpush3.bf16.msra.mxu1 %v3662_v15 }
0x14fa   :  { %3670 = vmatprep.subr.bf16.mxu1 %v3929_v3 }
0x1503   :  { %v3813_v12 = vpop.eup %3812 }
0x1504   :  { %1040 = vrot.lane.b32.xlu1 %v3813_v12, %s3933_s3 }
0x1576   :  { %v1041_v14 = vpop.permute.xlu1 %1040 }
0x1577   :  { %v1043_v4 = vmul.f32 %v1041_v14, %v1038_v13 }
0x1579   :  { %v1046_v18 = vadd.f32 %v1045_v17, %v1043_v4 }
0x157b   :  { %1059 = vrot.lane.b32.xlu0 %v1046_v18, %s3933_s3 }
0x15ed   :  { %v1060_v19 = vpop.permute.xlu0 %1059 }
0x15ee   :  { %3403 = vmatmul.mubr.msk.f32.vlgmr.msra.gmra.mrb[8].mxu1 %vm182_vm3, %v1060_v19 }
0x15ef   :  { %3429 = vmatprep.mubr.msk.f32.mxu1 %vm3930_vm2, %v3931_v11  ;;  %3672 = vmatpush3.bf16.msra.mxu1 %v4293_v49 }
0x15f0   :  { %3673 = vmatprep.subr.bf16.mxu1 %v3929_v3 }
0x15f3   :  { %3675 = vmatpush3.bf16.msra.mxu1 %v4303_v52 }
0x15f4   :  { %3676 = vmatprep.subr.bf16.mxu1 %v3929_v3 }
0x16c1   :  { %v1129_v22 = vpop.f32.mrb[8].mxu1 }
0x16c2   :  { %v1130_v10 = vadd.f32 %v3101_v20, %v1129_v22  ;;  %v3404_v23 = vpop.f32.mrb[9].mxu1 }
0x16c4   :  { %v1141_v24 = vmul.f32 0.5, %v1130_v10  ;;  %1136 = vrot.lane.b32.xlu0 %v1130_v10, %s3934_s25  ;;  %1134 = vst.msk [vmem:[#allocation7] sm:$0x3] %vm1133_vm4, %v1130_v10 }
0x16c6   :  { %v1142_v25 = vmul.f32 1.442695, %v1141_v24 }
0x16c8   :  { %3814 = vpow2.f32 %v1142_v25  ;;  %v1655_v25 = vstv %s1423_s29  ;;  %s3053_s29 = sshll.u32 %s3935_s14, 4  ;;  %s3054_s29 = int_to_ptr.vmem [resolvable:$true] %s3053_s29 }
0x16c9   :  { %s3856_s4 = scalar_lea.vmem %s3054_s29, 32  ;;  %p3861_p6 = scmp.lt.s32.totalorder %s3054_s29, %s3054_s29 }
0x16ca   :  { %p3857_p5 = scmp.ne.s32.totalorder %s3054_s29, %s3856_s4  ;;  %p3862_p7 = scmp.lt.s32.totalorder %s3856_s4, %s3856_s4 }
0x16cc   :  { %p3863_p8 = por %p3862_p7, %p3861_p6 }
0x16ce   :  { %p3864_p9 = pnand %p3863_p8, %p3857_p5 }
0x16d2   :  { %v3815_v27 = vpop.eup %3814 }
0x16d3   :  { %1145 = vrot.lane.b32.xlu1 %v3815_v27, %s3934_s25 }
0x1736   :  { %v1137_v28 = vpop.permute.xlu0 %1136 }
0x1737   :  { %1139 = vst.msk [vmem:[#allocation9] sm:$0x3] %vm1133_vm4, %v1137_v28 }
0x1745   :  { %v1146_v30 = vpop.permute.xlu1 %1145 }
0x1746   :  { %v1148_v31 = vmul.f32 %v1146_v30, %v1140_v29 }
0x1748   :  { %v4246_v32 = vadd.f32 %v1148_v31, %v1130_v10 }
0x174a   :  { %1163 = vst.msk [vmem:[#allocation2] sm:$0x3] %vm1133_vm4, %v4246_v32  ;;  %1150 = vst.msk [vmem:[#allocation6] sm:$0x3] %vm1133_vm4, %v4246_v32  ;;  %3408 = vmatmul.mubr.msk.f32.vlgmr.msra.gmra.mrb[10].mxu0 %vm1173_vm5, %v4246_v32 }
0x174b   :  { %3418 = vmatprep.mubr.msk.f32.mxu0 %vm3930_vm2, %v3931_v11  ;;  %3666 = vmatpush3.bf16.msra.mxu0 %v4262_v35 }
0x174c   :  { %3667 = vmatprep.subr.bf16.mxu0 %v3929_v3 }
0x174f   :  { %3669 = vmatpush3.bf16.msra.mxu0 %v4272_v38 }
0x1750   :  { %3432 = vmatprep.subr.mxu0 %v3931_v11 }
0x181d   :  { %v1243_v40 = vpop.f32.mrb[10].mxu0 }
0x181e   :  { %v1244_v41 = vadd.f32 %v4279_v39, %v1243_v40  ;;  %v3409_v42 = vpop.f32.mrb[11].mxu0 }
0x1820   :  { %v1248_v43 = vmin.f32 %v1244_v41, 0.0  ;;  %vm1247_vm6 = vcmp.gt.f32.partialorder %v1244_v41, 0.0 }
0x1822   :  { %v1249_v44 = vmul.f32 1.442695, %v1248_v43 }
0x1824   :  { %3816 = vpow2.f32 %v1249_v44 }
0x182e   :  { %v3817_v45 = vpop.eup %3816 }
0x182f   :  { %v3106_v46 = vadd.f32 -1.0, %v3817_v45 }
0x1831   :  { %v1252_v47 = vsel %vm1247_vm6, %v1244_v41, %v3106_v46 }
0x1832   :  { %3419 = vmatmul.mubr.msk.f32.vlgmr.msra.gmra.mrb[12].mxu0 %vm182_vm3, %v1252_v47 }
0x1833   :  { %3433 = vmatpush3.msra.mxu0 %v4238_v26  ;;  %3434 = vmatprep.mubr.msk.f32.mxu0 %vm3930_vm2, %v3931_v11 }
0x1834   :  { %3682 = vmatprep.subr.bf16.mxu0 %v3929_v3 }
0x1905   :  { %v1328_v54 = vpop.f32.mrb[12].mxu0 }
0x1906   :  { %v1329_v55 = vadd.f32 %v4310_v53, %v1328_v54  ;;  %v3420_v56 = vpop.f32.mrb[13].mxu0 }
0x1908   :  { %v1333_v57 = vmin.f32 %v1329_v55, 0.0  ;;  %vm1332_vm7 = vcmp.gt.f32.partialorder %v1329_v55, 0.0 }
0x190a   :  { %v1334_v58 = vmul.f32 1.442695, %v1333_v57 }
0x190c   :  { %3818 = vpow2.f32 %v1334_v58 }
0x1916   :  { %v3819_v59 = vpop.eup %3818 }
0x1917   :  { %v3109_v60 = vadd.f32 -1.0, %v3819_v59 }
0x1919   :  { %v1337_v61 = vsel %vm1332_vm7, %v1329_v55, %v3109_v60 }
0x191a   :  { %3430 = vmatmul.mubr.msk.f32.vlgmr.msra.gmra.mrb[10].mxu1 %vm182_vm3, %v1337_v61 }
0x191b   :  { %3678 = vmatpush3.bf16.msra.mxu1 %v4262_v35  ;;  %3445 = vmatprep.mubr.msk.f32.mxu1 %vm3930_vm2, %v3931_v11 }
0x191c   :  { %3679 = vmatprep.subr.bf16.mxu1 %v3929_v3 }
0x191f   :  { %3681 = vmatpush3.bf16.msra.mxu1 %v4272_v38 }
0x1920   :  { %3694 = vmatprep.subr.bf16.mxu1 %v3929_v3 }
0x19ed   :  { %v1413_v63 = vpop.f32.mrb[10].mxu1 }
0x19ee   :  { %v1414_v1 = vadd.f32 %v4326_v62, %v1413_v63  ;;  %v3431_v2 = vpop.f32.mrb[11].mxu1 }
0x19f0   :  { %v1418_v5 = vmul.f32 %v1417_v0, %v1414_v1 }
0x19f2   :  { %v1419_v16 = vadd.f32 %v1418_v5, %v4246_v32 }
0x19f4   :  { %1420 = vst.msk [vmem:[#allocation2 + $0x2] sm:$0x3] %vm1133_vm4, %v1419_v16  ;;  %3435 = vmatmul.mubr.msk.f32.vlgmr.msra.gmra.mrb[14].mxu0 %vm1173_vm5, %v1419_v16 }
0x19f5   :  { %3684 = vmatpush3.bf16.msra.mxu0 %v4293_v49  ;;  %3456 = vmatprep.mubr.msk.f32.mxu0 %vm3930_vm2, %v3931_v11 }
0x19f6   :  { %3685 = vmatprep.subr.bf16.mxu0 %v3929_v3 }
0x19f9   :  { %3687 = vmatpush3.bf16.msra.mxu0 %v4303_v52 }
0x19fa   :  { %3459 = vmatprep.subr.mxu0 %v3931_v11 }
0x1ac7   :  { %v1493_v6 = vpop.f32.mrb[14].mxu0 }
0x1ac8   :  { %v1494_v7 = vadd.f32 %v4279_v39, %v1493_v6  ;;  %v3436_v8 = vpop.f32.mrb[15].mxu0 }
0x1aca   :  { %v1498_v9 = vmin.f32 %v1494_v7, 0.0  ;;  %vm1497_vm8 = vcmp.gt.f32.partialorder %v1494_v7, 0.0 }
0x1acc   :  { %v1499_v15 = vmul.f32 1.442695, %v1498_v9 }
0x1ace   :  { %3820 = vpow2.f32 %v1499_v15 }
0x1ad8   :  { %v3821_v12 = vpop.eup %3820 }
0x1ad9   :  { %v3115_v13 = vadd.f32 -1.0, %v3821_v12 }
0x1adb   :  { %v1502_v14 = vsel %vm1497_vm8, %v1494_v7, %v3115_v13 }
0x1adc   :  { %3446 = vmatmul.mubr.msk.f32.vlgmr.msra.gmra.mrb[12].mxu1 %vm182_vm3, %v1502_v14  ;;  %v2131_v14 = vstv %s1899_s23 }
0x1add   :  { %3696 = vmatpush3.bf16.msra.mxu1 %v4293_v49  ;;  %3483 = vmatprep.mubr.msk.f32.mxu1 %vm3930_vm2, %v3931_v11 }
0x1ade   :  { %3697 = vmatprep.subr.bf16.mxu1 %v3929_v3 }
0x1ae1   :  { %3699 = vmatpush3.bf16.msra.mxu1 %v4303_v52 }
0x1ae2   :  { %3700 = vmatprep.subr.bf16.mxu1 %v3929_v3 }
0x1baf   :  { %v1572_v17 = vpop.f32.mrb[12].mxu1 }
0x1bb0   :  { %v1573_v4 = vadd.f32 %v4310_v53, %v1572_v17  ;;  %v3447_v18 = vpop.f32.mrb[13].mxu1 }
0x1bb2   :  { %v1577_v19 = vmin.f32 %v1573_v4, 0.0  ;;  %vm1576_vm9 = vcmp.gt.f32.partialorder %v1573_v4, 0.0 }
0x1bb4   :  { %v1578_v20 = vmul.f32 1.442695, %v1577_v19 }
0x1bb6   :  { %3822 = vpow2.f32 %v1578_v20 }
0x1bc0   :  { %v3823_v22 = vpop.eup %3822 }
0x1bc1   :  { %v3117_v10 = vadd.f32 -1.0, %v3823_v22 }
0x1bc3   :  { %v1581_v23 = vsel %vm1576_vm9, %v1573_v4, %v3117_v10 }
0x1bc4   :  { %3457 = vmatmul.mubr.msk.f32.vlgmr.msra.gmra.mrb[16].mxu0 %vm182_vm3, %v1581_v23 }
0x1bc5   :  { %3460 = vmatpush3.msra.mxu0 %v4238_v26  ;;  %3461 = vmatprep.mubr.msk.f32.mxu0 %vm3930_vm2, %v3931_v11 }
0x1bc6   :  { %3688 = vmatprep.subr.bf16.mxu0 %v3929_v3 }
0x1c97   :  { %v1651_v24 = vpop.f32.mrb[16].mxu0 }
0x1c98   :  { %v1652_v27 = vadd.f32 %v4326_v62, %v1651_v24  ;;  %v3458_v28 = vpop.f32.mrb[17].mxu0 }
0x1c9a   :  { %v1656_v29 = vmul.f32 %v1655_v25, %v1652_v27 }
0x1c9c   :  { %v1657_v30 = vadd.f32 %v1656_v29, %v1419_v16 }
0x1c9e   :  { %1658 = vst.msk [vmem:[#allocation2 + $0x4] sm:$0x3] %vm1133_vm4, %v1657_v30  ;;  %3462 = vmatmul.mubr.msk.f32.vlgmr.msra.gmra.mrb[18].mxu0 %vm1173_vm5, %v1657_v30 }
0x1c9f   :  { %3690 = vmatpush3.bf16.msra.mxu0 %v4262_v35  ;;  %3472 = vmatprep.mubr.msk.f32.mxu0 %vm3930_vm2, %v3931_v11 }
0x1ca0   :  { %3691 = vmatprep.subr.bf16.mxu0 %v3929_v3 }
0x1ca3   :  { %3693 = vmatpush3.bf16.msra.mxu0 %v4272_v38 }
0x1ca4   :  { %3486 = vmatprep.subr.mxu0 %v3931_v11 }
0x1d71   :  { %v1731_v31 = vpop.f32.mrb[18].mxu0 }
0x1d72   :  { %v1732_v32 = vadd.f32 %v4279_v39, %v1731_v31  ;;  %v3463_v33 = vpop.f32.mrb[19].mxu0 }
0x1d74   :  { %v1736_v34 = vmin.f32 %v1732_v32, 0.0  ;;  %vm1735_vm10 = vcmp.gt.f32.partialorder %v1732_v32, 0.0 }
0x1d76   :  { %v1737_v36 = vmul.f32 1.442695, %v1736_v34 }
0x1d78   :  { %3824 = vpow2.f32 %v1737_v36 }
0x1d82   :  { %v3825_v37 = vpop.eup %3824 }
0x1d83   :  { %v3122_v40 = vadd.f32 -1.0, %v3825_v37 }
0x1d85   :  { %v1740_v41 = vsel %vm1735_vm10, %v1732_v32, %v3122_v40 }
0x1d86   :  { %3473 = vmatmul.mubr.msk.f32.vlgmr.msra.gmra.mrb[20].mxu0 %vm182_vm3, %v1740_v41  ;;  %v2369_v41 = vstv %s2137_s24 }
0x1d87   :  { %3487 = vmatpush3.msra.mxu0 %v4238_v26  ;;  %3488 = vmatprep.mubr.msk.f32.mxu0 %vm3930_vm2, %v3931_v11 }
0x1d88   :  { %3706 = vmatprep.subr.bf16.mxu0 %v3929_v3 }
0x1e59   :  { %v1810_v42 = vpop.f32.mrb[20].mxu0 }
0x1e5a   :  { %v1811_v43 = vadd.f32 %v4310_v53, %v1810_v42  ;;  %v3474_v44 = vpop.f32.mrb[21].mxu0 }
0x1e5c   :  { %v1815_v45 = vmin.f32 %v1811_v43, 0.0  ;;  %vm1814_vm11 = vcmp.gt.f32.partialorder %v1811_v43, 0.0 }
0x1e5e   :  { %v1816_v46 = vmul.f32 1.442695, %v1815_v45 }
0x1e60   :  { %3826 = vpow2.f32 %v1816_v46 }
0x1e6a   :  { %v3827_v47 = vpop.eup %3826 }
0x1e6b   :  { %v3124_v21 = vadd.f32 -1.0, %v3827_v47 }
0x1e6d   :  { %v1819_v48 = vsel %vm1814_vm11, %v1811_v43, %v3124_v21 }
0x1e6e   :  { %3484 = vmatmul.mubr.msk.f32.vlgmr.msra.gmra.mrb[14].mxu1 %vm182_vm3, %v1819_v48 }
0x1e6f   :  { %3702 = vmatpush3.bf16.msra.mxu1 %v4262_v35  ;;  %3499 = vmatprep.mubr.msk.f32.mxu1 %vm3930_vm2, %v3931_v11 }
0x1e70   :  { %3703 = vmatprep.subr.bf16.mxu1 %v3929_v3 }
0x1e73   :  { %3705 = vmatpush3.bf16.msra.mxu1 %v4272_v38 }
0x1e74   :  { %3513 = vmatprep.subr.mxu1 %v3931_v11 }
0x1f41   :  { %v1889_v50 = vpop.f32.mrb[14].mxu1 }
0x1f42   :  { %v1890_v54 = vadd.f32 %v4326_v62, %v1889_v50  ;;  %v3485_v55 = vpop.f32.mrb[15].mxu1 }
0x1f44   :  { %v1894_v56 = vmul.f32 %v1893_v51, %v1890_v54 }
0x1f46   :  { %v1895_v57 = vadd.f32 %v1894_v56, %v1657_v30 }
0x1f48   :  { %1896 = vst.msk [vmem:[#allocation2 + $0x6] sm:$0x3] %vm1133_vm4, %v1895_v57  ;;  %3489 = vmatmul.mubr.msk.f32.vlgmr.msra.gmra.mrb[22].mxu0 %vm1173_vm5, %v1895_v57 }
0x1f49   :  { %3708 = vmatpush3.bf16.msra.mxu0 %v4293_v49  ;;  %3510 = vmatprep.mubr.msk.f32.mxu0 %vm3930_vm2, %v3931_v11 }
0x1f4a   :  { %3709 = vmatprep.subr.bf16.mxu0 %v3929_v3 }
0x1f4d   :  { %3711 = vmatpush3.bf16.msra.mxu0 %v4303_v52 }
0x1f4e   :  { %3712 = vmatprep.subr.bf16.mxu0 %v3929_v3 }
0x201b   :  { %v1969_v58 = vpop.f32.mrb[22].mxu0 }
0x201c   :  { %v1970_v59 = vadd.f32 %v4279_v39, %v1969_v58  ;;  %v3490_v60 = vpop.f32.mrb[23].mxu0 }
0x201e   :  { %v1974_v61 = vmin.f32 %v1970_v59, 0.0  ;;  %vm1973_vm12 = vcmp.gt.f32.partialorder %v1970_v59, 0.0 }
0x2020   :  { %v1975_v63 = vmul.f32 1.442695, %v1974_v61 }
0x2022   :  { %3828 = vpow2.f32 %v1975_v63 }
0x202c   :  { %v3829_v0 = vpop.eup %3828 }
0x202d   :  { %v3129_v1 = vadd.f32 -1.0, %v3829_v0 }
0x202f   :  { %v1978_v2 = vsel %vm1973_vm12, %v1970_v59, %v3129_v1  ;;  %v2607_v1 = vstv %s2375_s11 }
0x2030   :  { %3500 = vmatmul.mubr.msk.f32.vlgmr.msra.gmra.mrb[16].mxu1 %vm182_vm3, %v1978_v2 }
0x2031   :  { %3514 = vmatpush3.msra.mxu1 %v4238_v26  ;;  %3515 = vmatprep.mubr.msk.f32.mxu1 %vm3930_vm2, %v3931_v11 }
0x2032   :  { %3718 = vmatprep.subr.bf16.mxu1 %v3929_v3 }
0x2103   :  { %v2048_v5 = vpop.f32.mrb[16].mxu1 }
0x2104   :  { %v2049_v16 = vadd.f32 %v4310_v53, %v2048_v5  ;;  %v3501_v6 = vpop.f32.mrb[17].mxu1 }
0x2106   :  { %v2053_v7 = vmin.f32 %v2049_v16, 0.0  ;;  %vm2052_vm13 = vcmp.gt.f32.partialorder %v2049_v16, 0.0 }
0x2108   :  { %v2054_v8 = vmul.f32 1.442695, %v2053_v7 }
0x210a   :  { %3830 = vpow2.f32 %v2054_v8 }
0x2114   :  { %v3831_v9 = vpop.eup %3830 }
0x2115   :  { %v3131_v15 = vadd.f32 -1.0, %v3831_v9 }
0x2117   :  { %v2057_v12 = vsel %vm2052_vm13, %v2049_v16, %v3131_v15 }
0x2118   :  { %3511 = vmatmul.mubr.msk.f32.vlgmr.msra.gmra.mrb[24].mxu0 %vm182_vm3, %v2057_v12 }
0x2119   :  { %3714 = vmatpush3.bf16.msra.mxu0 %v4262_v35  ;;  %3526 = vmatprep.mubr.msk.f32.mxu0 %vm3930_vm2, %v3931_v11 }
0x211a   :  { %3715 = vmatprep.subr.bf16.mxu0 %v3929_v3 }
0x211d   :  { %3717 = vmatpush3.bf16.msra.mxu0 %v4272_v38 }
0x211e   :  { %3540 = vmatprep.subr.mxu0 %v3931_v11 }
0x21eb   :  { %v2127_v13 = vpop.f32.mrb[24].mxu0 }
0x21ec   :  { %v2128_v17 = vadd.f32 %v4326_v62, %v2127_v13  ;;  %v3512_v4 = vpop.f32.mrb[25].mxu0 }
0x21ee   :  { %v2132_v18 = vmul.f32 %v2131_v14, %v2128_v17 }
0x21f0   :  { %v2133_v19 = vadd.f32 %v2132_v18, %v1895_v57 }
0x21f2   :  { %2134 = vst.msk [vmem:[#allocation2 + $0x8] sm:$0x3] %vm1133_vm4, %v2133_v19  ;;  %3516 = vmatmul.mubr.msk.f32.vlgmr.msra.gmra.mrb[18].mxu1 %vm1173_vm5, %v2133_v19 }
0x21f3   :  { %3720 = vmatpush3.bf16.msra.mxu1 %v4293_v49  ;;  %3537 = vmatprep.mubr.msk.f32.mxu1 %vm3930_vm2, %v3931_v11 }
0x21f4   :  { %3721 = vmatprep.subr.bf16.mxu1 %v3929_v3 }
0x21f7   :  { %3723 = vmatpush3.bf16.msra.mxu1 %v4303_v52 }
0x21f8   :  { %3724 = vmatprep.subr.bf16.mxu1 %v3929_v3 }
0x22c5   :  { %v2207_v20 = vpop.f32.mrb[18].mxu1 }
0x22c6   :  { %v2208_v22 = vadd.f32 %v4279_v39, %v2207_v20  ;;  %v3517_v10 = vpop.f32.mrb[19].mxu1  ;;  %v2941_v20 = vld [vmem:[%s4562_s17 + $0x8] sm:$0xff] }
0x22c8   :  { %v2212_v23 = vmin.f32 %v2208_v22, 0.0  ;;  %vm2211_vm14 = vcmp.gt.f32.partialorder %v2208_v22, 0.0 }
0x22ca   :  { %v2213_v24 = vmul.f32 1.442695, %v2212_v23  ;;  %v2845_v23 = vstv %s2613_s27 }
0x22cc   :  { %3832 = vpow2.f32 %v2213_v24 }
0x22d6   :  { %v3833_v25 = vpop.eup %3832 }
0x22d7   :  { %v3136_v27 = vadd.f32 -1.0, %v3833_v25 }
0x22d9   :  { %v2216_v28 = vsel %vm2211_vm14, %v2208_v22, %v3136_v27 }
0x22da   :  { %3527 = vmatmul.mubr.msk.f32.vlgmr.msra.gmra.mrb[26].mxu0 %vm182_vm3, %v2216_v28 }
0x22db   :  { %3541 = vmatpush3.msra.mxu0 %v4238_v26  ;;  %3542 = vmatprep.mubr.msk.f32.mxu0 %vm3930_vm2, %v3931_v11 }
0x22dc   :  { %3730 = vmatprep.subr.bf16.mxu0 %v3929_v3 }
0x23ad   :  { %v2286_v29 = vpop.f32.mrb[26].mxu0 }
0x23ae   :  { %v2287_v30 = vadd.f32 %v4310_v53, %v2286_v29  ;;  %v3528_v31 = vpop.f32.mrb[27].mxu0 }
0x23af   :  { %v2943_v31 = vld [vmem:[%s4562_s17 + $0x18] sm:$0xff] }
0x23b0   :  { %v2291_v32 = vmin.f32 %v2287_v30, 0.0  ;;  %vm2290_vm15 = vcmp.gt.f32.partialorder %v2287_v30, 0.0 }
0x23b2   :  { %v2292_v33 = vmul.f32 1.442695, %v2291_v32 }
0x23b4   :  { %3834 = vpow2.f32 %v2292_v33 }
0x23be   :  { %v3835_v34 = vpop.eup %3834 }
0x23bf   :  { %v3138_v36 = vadd.f32 -1.0, %v3835_v34 }
0x23c1   :  { %v2295_v37 = vsel %vm2290_vm15, %v2287_v30, %v3138_v36  ;;  %v2942_v30 = vld [vmem:[%s4562_s17 + $0x10] sm:$0xff] }
0x23c2   :  { %3538 = vmatmul.mubr.msk.f32.vlgmr.msra.gmra.mrb[20].mxu1 %vm182_vm3, %v2295_v37  ;;  %v3752_v32 = vpack.c.bf16 %v2943_v31, %v2942_v30 }
0x23c3   :  { %3726 = vmatpush3.bf16.msra.mxu1 %v4262_v35  ;;  %3553 = vmatprep.mubr.msk.f32.mxu1 %vm3930_vm2, %v3931_v11 }
0x23c4   :  { %3727 = vmatprep.subr.bf16.mxu1 %v3929_v3 }
0x23c7   :  { %3729 = vmatpush3.bf16.msra.mxu1 %v4272_v38 }
0x23c8   :  { %3567 = vmatprep.subr.mxu1 %v3931_v11 }
0x2495   :  { %v2365_v40 = vpop.f32.mrb[20].mxu1 }
0x2496   :  { %v2366_v42 = vadd.f32 %v4326_v62, %v2365_v40  ;;  %v3539_v43 = vpop.f32.mrb[21].mxu1 }
0x2498   :  { %v2370_v44 = vmul.f32 %v2369_v41, %v2366_v42 }
0x249a   :  { %v2371_v45 = vadd.f32 %v2370_v44, %v2133_v19  ;;  %v2851_v19 = vld [vmem:[%s4560_s15] sm:$0xff] }
0x249c   :  { %2372 = vst.msk [vmem:[#allocation2 + $0xa] sm:$0x3] %vm1133_vm4, %v2371_v45  ;;  %3543 = vmatmul.mubr.msk.f32.vlgmr.msra.gmra.mrb[28].mxu0 %vm1173_vm5, %v2371_v45 }
0x249d   :  { %3732 = vmatpush3.bf16.msra.mxu0 %v4293_v49  ;;  %3564 = vmatprep.mubr.msk.f32.mxu0 %vm3930_vm2, %v3931_v11 }
0x249e   :  { %3733 = vmatprep.subr.bf16.mxu0 %v3929_v3 }
0x24a1   :  { %3735 = vmatpush3.bf16.msra.mxu0 %v4303_v52 }
0x24a2   :  { %3736 = vmatprep.subr.bf16.mxu0 %v3929_v3 }
0x256f   :  { %v2445_v46 = vpop.f32.mrb[28].mxu0 }
0x2570   :  { %v2446_v47 = vadd.f32 %v4279_v39, %v2445_v46  ;;  %v3544_v21 = vpop.f32.mrb[29].mxu0 }
0x2572   :  { %v2450_v48 = vmin.f32 %v2446_v47, 0.0  ;;  %vm2449_vm0 = vcmp.gt.f32.partialorder %v2446_v47, 0.0 }
0x2574   :  { %v2451_v50 = vmul.f32 1.442695, %v2450_v48 }
0x2576   :  { %3836 = vpow2.f32 %v2451_v50 }
0x2580   :  { %v3837_v51 = vpop.eup %3836 }
0x2581   :  { %v3143_v54 = vadd.f32 -1.0, %v3837_v51 }
0x2583   :  { %v2454_v55 = vsel %vm2449_vm0, %v2446_v47, %v3143_v54 }
0x2584   :  { %3554 = vmatmul.mubr.msk.f32.vlgmr.msra.gmra.mrb[22].mxu1 %vm182_vm3, %v2454_v55 }
0x2585   :  { %3568 = vmatpush3.msra.mxu1 %v4238_v26  ;;  %3569 = vmatprep.mubr.msk.f32.mxu1 %vm3930_vm2, %v3931_v11 }
0x2586   :  { %3742 = vmatprep.subr.bf16.mxu1 %v3929_v3 }
0x2657   :  { %v2524_v56 = vpop.f32.mrb[22].mxu1 }
0x2658   :  { %v2525_v57 = vadd.f32 %v4310_v53, %v2524_v56  ;;  %v3555_v58 = vpop.f32.mrb[23].mxu1 }
0x265a   :  { %v2529_v59 = vmin.f32 %v2525_v57, 0.0  ;;  %vm2528_vm1 = vcmp.gt.f32.partialorder %v2525_v57, 0.0 }
0x265c   :  { %v2530_v60 = vmul.f32 1.442695, %v2529_v59 }
0x265e   :  { %3838 = vpow2.f32 %v2530_v60 }
0x2668   :  { %v3839_v61 = vpop.eup %3838 }
0x2669   :  { %v3145_v63 = vadd.f32 -1.0, %v3839_v61 }
0x266b   :  { %v2533_v0 = vsel %vm2528_vm1, %v2525_v57, %v3145_v63 }
0x266c   :  { %3565 = vmatmul.mubr.msk.f32.vlgmr.msra.gmra.mrb[30].mxu0 %vm182_vm3, %v2533_v0 }
0x266d   :  { %3738 = vmatpush3.bf16.msra.mxu0 %v4262_v35  ;;  %3580 = vmatprep.mubr.msk.f32.mxu0 %vm3930_vm2, %v3931_v11 }
0x266e   :  { %3739 = vmatprep.subr.bf16.mxu0 %v3929_v3 }
0x2671   :  { %3741 = vmatpush3.bf16.msra.mxu0 %v4272_v38 }
0x2672   :  { %3594 = vmatprep.subr.mxu0 %v2851_v19 }
0x273f   :  { %v2603_v26 = vpop.f32.mrb[30].mxu0 }
0x2740   :  { %v2604_v2 = vadd.f32 %v4326_v62, %v2603_v26  ;;  %v3566_v5 = vpop.f32.mrb[31].mxu0 }
0x2742   :  { %v2608_v16 = vmul.f32 %v2607_v1, %v2604_v2 }
0x2744   :  { %v2609_v6 = vadd.f32 %v2608_v16, %v2371_v45 }
0x2746   :  { %2610 = vst.msk [vmem:[#allocation2 + $0xc] sm:$0x3] %vm1133_vm4, %v2609_v6  ;;  %3570 = vmatmul.mubr.msk.f32.vlgmr.msra.gmra.mrb[24].mxu1 %vm1173_vm5, %v2609_v6 }
0x2747   :  { %3744 = vmatpush3.bf16.msra.mxu1 %v4293_v49  ;;  %3591 = vmatprep.mubr.msk.f32.mxu1 %vm3930_vm2, %v3931_v11  ;;  %v2849_v49 = vld [vmem:[#allocation2] sm:$0xff] }
0x2748   :  { %3745 = vmatprep.subr.bf16.mxu1 %v3929_v3 }
0x274b   :  { %3747 = vmatpush3.bf16.msra.mxu1 %v4303_v52 }
0x2819   :  { %v2683_v35 = vpop.f32.mrb[24].mxu1 }
0x281a   :  { %v2684_v38 = vadd.f32 %v4279_v39, %v2683_v35  ;;  %v3571_v7 = vpop.f32.mrb[25].mxu1 }
0x281c   :  { %v2688_v8 = vmin.f32 %v2684_v38, 0.0  ;;  %vm2687_vm6 = vcmp.gt.f32.partialorder %v2684_v38, 0.0 }
0x281e   :  { %v2689_v9 = vmul.f32 1.442695, %v2688_v8 }
0x2820   :  { %3840 = vpow2.f32 %v2689_v9 }
0x282a   :  { %v3841_v15 = vpop.eup %3840 }
0x282b   :  { %v3150_v12 = vadd.f32 -1.0, %v3841_v15 }
0x282d   :  { %v2692_v13 = vsel %vm2687_vm6, %v2684_v38, %v3150_v12 }
0x282e   :  { %3581 = vmatmul.mubr.msk.f32.vlgmr.msra.gmra.mrb[32].mxu0 %vm182_vm3, %v2692_v13 }
0x282f   :  { %3596 = vmatprep.mubr.msk.f32.mxu0 %vm1173_vm5, %v2849_v49  ;;  %3595 = vmatpush3.msra.mxu0 %v2851_v19 }
0x2901   :  { %v2762_v11 = vpop.f32.mrb[32].mxu0 }
0x2902   :  { %v2763_v3 = vadd.f32 %v4310_v53, %v2762_v11  ;;  %v3582_v52 = vpop.f32.mrb[33].mxu0  ;;  %v2940_v53 = vld [vmem:[%s4562_s17] sm:$0xff]  ;;  %s3043_s17 = sshll.u32 %s3936_s30, 4  ;;  %s3044_s17 = int_to_ptr.vmem [resolvable:$true] %s3043_s17 }
0x2903   :  { %v3748_v22 = vpack.c.bf16 %v2941_v20, %v2940_v53 }
0x2904   :  { %v2767_v14 = vmin.f32 %v2763_v3, 0.0  ;;  %vm2766_vm2 = vcmp.gt.f32.partialorder %v2763_v3, 0.0 }
0x2905   :  { %3749 = vmatprep.subr.bf16.mxu1 %v3748_v22 }
0x2906   :  { %v2768_v17 = vmul.f32 1.442695, %v2767_v14 }
0x2908   :  { %3842 = vpow2.f32 %v2768_v17 }
0x2912   :  { %v3843_v39 = vpop.eup %3842 }
0x2913   :  { %v3152_v4 = vadd.f32 -1.0, %v3843_v39 }
0x2915   :  { %v2771_v18 = vsel %vm2766_vm2, %v2763_v3, %v3152_v4 }
0x2916   :  { %3592 = vmatmul.mubr.msk.f32.vlgmr.msra.gmra.mrb[26].mxu1 %vm182_vm3, %v2771_v18 }
0x2917   :  { %3751 = vmatpush3.bf16.msra.mxu1 %v3748_v22 }
0x2918   :  { %3753 = vmatprep.subr.bf16.mxu1 %v3752_v32 }
0x291b   :  { %3755 = vmatpush3.bf16.msra.mxu1 %v3752_v32 }
0x29e9   :  { %v2841_v10 = vpop.f32.mrb[26].mxu1 }
0x29ea   :  { %v2842_v24 = vadd.f32 %v4326_v62, %v2841_v10  ;;  %v3593_v25 = vpop.f32.mrb[27].mxu1  ;;  %v3154_v62 = vld [vmem:[%s4561_s16] ss:$0 sm:$0xff] }
0x29ec   :  { %v2846_v27 = vmul.f32 %v2845_v23, %v2842_v24 }
0x29ee   :  { %v2847_v28 = vadd.f32 %v2846_v27, %v2609_v6 }
0x29f0   :  { %2848 = vst.msk [vmem:[#allocation2 + $0xe] sm:$0x3] %vm1133_vm4, %v2847_v28 }
0x29f7   :  { %v2850_v29 = vld [vmem:[#allocation2 + $0x8] sm:$0xff] }
0x29f8   :  { %3597 = vmatmul.mubr.msk.f32.vlgmr.msra.gmra.mrb[34].mxu0 %vm1173_vm5, %v2850_v29 }
0x2acb   :  { %v3598_v33 = vpop.f32.mrb[34].mxu0 }
0x2acc   :  { %v2931_v34 = vpop.f32.mrb[35].mxu0  ;;  %v2937_v37 = vadd.f32 %v3598_v33, %v3154_v62 }
0x2acd   :  { %v2932_v36 = vadd.f32 %v3154_v62, %v2931_v34 }
0x2acf   :  { %3607 = vmatprep.mubr.msk.f32.mxu1 %vm182_vm3, %v2932_v36 }
0x2ad0   :  { %3608 = vmatmul.mubr.msk.f32.vlgmr.msra.gmra.mrb[28].mxu1 %vm182_vm3, %v2937_v37 }
0x2ad1   :  { %3867 = shalt.err (!%p3864_p9)
}
0x2ad2   :  { %s3868_s23 = scalar_lea.hbm %s4566_s21, 32 }
0x2ad3   :  { %p3869_p10 = scmp.ne.s32.totalorder %s4566_s21, %s3868_s23  ;;  %p3872_p11 = scmp.lt.u32.totalorder %s3868_s23, %s4566_s21 }
0x2ad5   :  { %p3874_p12 = pnand %p3872_p11, %p3869_p10 }
0x2ad7   :  { %3877 = shalt.err (!%p3874_p12)
}
0x2ad8   :  { %3056 = dma.vmem_to_hbm [thread:$0]  %s3054_s29, 32, %s4566_s21, [#allocation8]  }
0x2ad9   :  { %s3878_s25 = scalar_lea.vmem %s3044_s17, 32  ;;  %p3883_p0 = scmp.lt.s32.totalorder %s3044_s17, %s3044_s17 }
0x2ada   :  { %p3879_p13 = scmp.ne.s32.totalorder %s3044_s17, %s3878_s25  ;;  %p3884_p1 = scmp.lt.s32.totalorder %s3878_s25, %s3878_s25 }
0x2adc   :  { %p3885_p2 = por %p3884_p1, %p3883_p0 }
0x2ade   :  { %p3886_p3 = pnand %p3885_p2, %p3879_p13 }
0x2ae0   :  { %3889 = shalt.err (!%p3886_p3)
}
0x2ae1   :  { %s3890_s8 = scalar_lea.hbm %s4565_s20, 32 }
0x2ae2   :  { %p3891_p4 = scmp.ne.s32.totalorder %s4565_s20, %s3890_s8  ;;  %p3894_p5 = scmp.lt.u32.totalorder %s3890_s8, %s4565_s20 }
0x2ae4   :  { %p3896_p6 = pnand %p3894_p5, %p3891_p4 }
0x2ae6   :  { %3899 = shalt.err (!%p3896_p6)
}
0x2ae7   :  { %3046 = dma.vmem_to_hbm [thread:$0]  %s3044_s17, 32, %s4565_s20, [#allocation4]  }
0x2ae8   :  { %s3937_s9 = smov [#allocation9]  }
0x2ae9   :  { %s3063_s3 = sshll.u32 %s3937_s9, 4  ;;  %s3064_s3 = int_to_ptr.vmem [resolvable:$true] %s3063_s3 }
0x2aea   :  { %s3900_s28 = scalar_lea.vmem %s3064_s3, 32  ;;  %p3905_p8 = scmp.lt.s32.totalorder %s3064_s3, %s3064_s3 }
0x2aeb   :  { %p3901_p7 = scmp.ne.s32.totalorder %s3064_s3, %s3900_s28  ;;  %p3906_p9 = scmp.lt.s32.totalorder %s3900_s28, %s3900_s28 }
0x2aed   :  { %p3907_p10 = por %p3906_p9, %p3905_p8 }
0x2aef   :  { %p3908_p11 = pnand %p3907_p10, %p3901_p7 }
0x2af1   :  { %3911 = shalt.err (!%p3908_p11)
}
0x2af2   :  { %s3912_s30 = scalar_lea.hbm %s4567_s22, 32 }
0x2af3   :  { %p3913_p12 = scmp.ne.s32.totalorder %s4567_s22, %s3912_s30  ;;  %p3916_p13 = scmp.lt.u32.totalorder %s3912_s30, %s4567_s22 }
0x2af5   :  { %p3918_p0 = pnand %p3916_p13, %p3913_p12 }
0x2af7   :  { %3921 = shalt.err (!%p3918_p0)
}
0x2af8   :  { %3066 = dma.vmem_to_hbm [thread:$0]  %s3064_s3, 32, %s4567_s22, [#allocation8]   ;;  %v3157_v40 = vld [vmem:[%s4563_s18] ss:$0 sm:$0xff]  ;;  %vm3032_vm3 = vcmask 31744  }
0x2ba3   :  { %v3609_v41 = vpop.f32.mrb[28].mxu1 }
0x2ba4   :  { %v3029_v42 = vadd.f32 %v3609_v41, %v3157_v40  ;;  %v3023_v43 = vpop.f32.mrb[29].mxu1 }
0x2ba5   :  { %v3024_v44 = vadd.f32 %v3157_v40, %v3023_v43 }
0x2ba6   :  { %3034 = vst.msk [vmem:[%s4564_s19 + $0x8] sm:$0xff] %vm3032_vm3, %v3029_v42 }
0x2ba7   :  { %3033 = vst.msk [vmem:[%s4564_s19] sm:$0xff] %vm3032_vm3, %v3024_v44 }
0x2ba8   :  { %3924 = dma.done.wait [#allocation4], 32  }
0x2ba9   :  { %3925 = vsyncadd [#allocation4], 4294967264 }
0x2baa   :  { %3926 = dma.done.wait [#allocation8], 64  }
0x2bab   :  { %3927 = vsyncadd [#allocation8], 4294967232 }
0x2bac   :  { %3078 = vsyncpa [#allocation4], 1 }
0x2bad   :  { %3079 = vsyncpa [#allocation8], 1 }
0x2bae   :  { %3080 = vsyncpa [#allocation5], 1 }

</bundles_post_ra>
